<compile_context>
chip_gen: v7x
topology: tpu7x:2x2x1
jax: 0.10.0
libtpu: 0.0.40
codegen_flags: <defaults>
</compile_context>

<pallas_src>
import functools

import jax
import jax.numpy as jnp
from jax.experimental import pallas as pl
from jax.experimental.pallas import tpu as pltpu


def _fft_block_kernel(n_head, d_head, seq_len, block_b, exp_in_bf16,
                      x_ref, kvalid_ref, npad_ref,
                      wq_ref, bq_ref, wk_ref, bk_ref, wv_ref, bv_ref,
                      wo_ref, bo_ref, w1_ref, b1_ref, w2_ref, b2_ref,
                      o_ref, ctx_ref):
    """One grid step == `block_b` batch elements, rows flattened to (block_b*T, D).

    ctx_ref is an (N, D) bf16 VMEM scratch holding the merged per-head attention contexts so
    the output projection can run as a single K=D GEMM.
    """
    H, dh, T, bb = n_head, d_head, seq_len, block_b
    D = H * dh
    N = bb * T

    x = x_ref[...]                                   # (N, D) bf16 activations
    npad = npad_ref[...]                             # (N, 1) f32 non-pad multiplier
    # Additive key-padding mask rebuilt in VMEM from the (bb, 1, T) key-validity vector;
    # broadcast over query rows and (implicitly, per loop iteration) over heads.
    amask = jnp.where(kvalid_ref[...] > 0.0, 0.0, -1e4)      # (bb, 1, T) f32

    # --- attention, one head at a time (per-head weights pre-split on the host) -------------
    for h in range(H):
        # Per-head projections: (N, D) @ (D, dh), f32 accumulate, cast straight to bf16.
        # The 1/d_head**0.25 q/k scale is folded into wq/bq and wk/bk on the host.
        q = (jnp.dot(x, wq_ref[h], preferred_element_type=jnp.float32)
             + bq_ref[h]).astype(jnp.bfloat16)
        k = (jnp.dot(x, wk_ref[h], preferred_element_type=jnp.float32)
             + bk_ref[h]).astype(jnp.bfloat16)
        v = (jnp.dot(x, wv_ref[h], preferred_element_type=jnp.float32)
             + bv_ref[h]).astype(jnp.bfloat16)
        q3 = q.reshape(bb, T, dh)
        k3 = k.reshape(bb, T, dh)
        v3 = v.reshape(bb, T, dh)

        s = jnp.einsum('bqe,bke->bqk', q3, k3,
                       preferred_element_type=jnp.float32)    # (bb, T, T) f32
        s = s + amask                                          # key-padding mask
        s = s - jnp.max(s, axis=-1, keepdims=True)             # exp(s) <= 1 afterwards

        if exp_in_bf16:
            # v6e/v7x: bf16 EUP has ~2x transcendental throughput; p feeds the MXU in bf16
            # anyway, so no extra accuracy is lost.
            p = jnp.exp(s.astype(jnp.bfloat16))                # (bb, T, T) bf16, unnormalized
            denom = jnp.sum(p, axis=-1, keepdims=True).astype(jnp.float32)
        else:
            p_f32 = jnp.exp(s)                                 # v5e: no bf16 EUP
            denom = jnp.sum(p_f32, axis=-1, keepdims=True)
            p = p_f32.astype(jnp.bfloat16)

        # Normalize AFTER the value matmul: O(T*dh) multiplies instead of O(T*T).
        ctx = jnp.einsum('bqk,bke->bqe', p, v3,
                         preferred_element_type=jnp.float32)   # (bb, T, dh) f32
        ctx = ctx * pl.reciprocal(denom, approx=True)
        ctx_ref[:, h * dh:(h + 1) * dh] = ctx.reshape(N, dh).astype(jnp.bfloat16)

    # --- output projection: single K=D GEMM over the merged contexts (full MXU depth) -------
    ctx_all = ctx_ref[...]                                     # (N, D) bf16
    attn = jnp.dot(ctx_all, wo_ref[...], preferred_element_type=jnp.float32) + bo_ref[...]
    attn = attn * npad                                         # enc_output *= non_pad_mask

    # --- PositionWiseFF: dense_in -> relu -> dense_out (ffn dropout identity in eval) --------
    h1 = jnp.dot(attn.astype(jnp.bfloat16), w1_ref[...],
                 preferred_element_type=jnp.float32) + b1_ref[...]
    h1 = jnp.maximum(h1, 0.0)
    out = jnp.dot(h1.astype(jnp.bfloat16), w2_ref[...],
                  preferred_element_type=jnp.float32) + b2_ref[...]
    # TODO(synk): for d_model not a multiple of 128 (demo D=32) this is a masked partial store;
    # production FastSpeech d_model (384/512) is already lane-dense.
    # TODO(synk): emit bf16 output if downstream consumers accept it (halves HBM writeback).
    o_ref[...] = (out * npad).astype(o_ref.dtype)


def _prepare_weights(params, n_head, compute_dtype=jnp.bfloat16):
    """Host-side prep.

    Q/K/V weights: transpose to (in, out), split the output columns per head -> (H, D, d_head),
    fold the 1/d_head**0.25 scale into wq/bq and wk/bk, cast to bf16.  Out-proj / FFN weights:
    transpose to (in, out) and cast to bf16.  Biases stay f32 (tiny, added to f32 accumulators).
    """
    d_model = params["wq"].shape[0]
    dh = d_model // n_head
    scale = 1.0 / float(dh) ** 0.25

    def per_head_w(w, s=1.0):
        wt = jnp.asarray(w, jnp.float32).T * s                           # (in, out)
        return wt.reshape(d_model, n_head, dh).transpose(1, 0, 2).astype(compute_dtype)

    def per_head_b(b, s=1.0):
        return (jnp.asarray(b, jnp.float32).reshape(-1) * s).reshape(n_head, 1, dh)

    def full_w(w):
        return jnp.asarray(w, jnp.float32).T.astype(compute_dtype)

    def full_b(b):
        return jnp.asarray(b, jnp.float32).reshape(1, -1)

    # TODO(synk): on v7x the FFN weights (w1/w2, dominant FLOPs) could be stored fp8 with
    # per-tensor scales for ~2x MXU throughput; kept bf16 here for portability/accuracy.
    return [
        per_head_w(params["wq"], scale), per_head_b(params["bq"], scale),
        per_head_w(params["wk"], scale), per_head_b(params["bk"], scale),
        per_head_w(params["wv"]), per_head_b(params["bv"]),
        full_w(params["wo"]), full_b(params["bo"]),
        full_w(params["w1"]), full_b(params["b1"]),
        full_w(params["w2"]), full_b(params["b2"]),
    ]


def _chip_config():
    """Chip-aware VMEM budget / exp dtype / parallel-step target."""
    kind = ""
    try:
        kind = jax.devices()[0].device_kind.lower()
    except Exception:  # noqa: BLE001 - no device info available
        pass
    if "v7" in kind:
        # 64 MiB physical VMEM, 2 TensorCores: cap below physical, want >=4 grid steps.
        cfg = {"vmem_budget": 48 << 20, "exp_in_bf16": True, "min_blocks": 4}
    elif "v6" in kind:
        cfg = {"vmem_budget": 96 << 20, "exp_in_bf16": True, "min_blocks": 2}
    elif "v5" in kind:
        # v5e: 128 MiB physical VMEM but no bf16 EUP -> keep exp in f32.
        cfg = {"vmem_budget": 96 << 20, "exp_in_bf16": False, "min_blocks": 2}
    else:
        cfg = {"vmem_budget": 48 << 20, "exp_in_bf16": False, "min_blocks": 2}
    try:
        cap = int(pltpu.get_tpu_info().vmem_capacity_bytes)
        cfg["vmem_budget"] = min(cfg["vmem_budget"], int(cap * 0.75))
    except Exception:  # noqa: BLE001 - query API not available on this jax version
        pass
    return cfg


def _vmem_working_set(bb, T, D, d_inner, n_head, weight_bytes, weight_bufs):
    """Rough per-grid-step VMEM working-set estimate (bytes) for block_b = bb."""
    N = bb * T
    dh = D // n_head
    slabs = 2 * (N * D * 2) + 2 * (N * D * 4)          # x (bf16) + out (f32), double-buffered
    slabs += 2 * (N * 4 + bb * T * 4)                  # non-pad + key-validity
    attn = 3 * (bb * T * T * 4)                        # one head's scores/exp (+ slack), f32
    attn += 3 * (N * dh * 2)                           # one head's q/k/v, bf16
    ffn = N * D * 2 + 2 * (N * max(D, d_inner) * 4)    # ctx scratch (bf16) + attn/h1 (f32)
    return slabs + attn + ffn + weight_bufs * weight_bytes


def _pick_block_b(B, T, D, d_inner, n_head, weight_bytes, cfg):
    """Largest batch block that fits the chip's VMEM budget, preferring >= min_blocks steps."""
    cands = [bb for bb in range(1, B + 1)
             if B % bb == 0 and (bb == B or (bb * T) % 16 == 0)]   # bf16 sublane tile = 16 rows
    feasible = [bb for bb in cands
                if _vmem_working_set(bb, T, D, d_inner, n_head, weight_bytes, 1)
                <= cfg["vmem_budget"]]
    if not feasible:
        # TODO(synk): for very long T, tile attention over key blocks (online softmax) instead
        # of only shrinking the batch block; fall back to the smallest legal block for now.
        return min(cands)
    preferred = [bb for bb in feasible if B // bb >= cfg["min_blocks"]]
    return max(preferred) if preferred else max(feasible)


def fft_block(enc_input, key_valid, non_pad_mask, params, n_head, block_b=None):
    """FFTBlock forward.

    enc_input:    (B, T, D) activations.
    key_valid:    (B, T) with 1.0 where a key position may be attended to, 0.0 where padded.
                  The additive (B,T,T) attention mask is rebuilt in-kernel from this vector.
    non_pad_mask: (B, T, 1) (or (B, T)) multiplier applied after attention and after the FFN.
                  Fully padded query rows rely on this multiplier to be zeroed (matches the
                  PyTorch reference behavior).
    """
    B, T, D = enc_input.shape
    assert D % n_head == 0
    d_head = D // n_head
    d_inner = params["w1"].shape[0]

    weights = _prepare_weights(params, n_head)
    weight_bytes = sum(int(w.size) * w.dtype.itemsize for w in weights)
    cfg = _chip_config()

    if block_b is None:
        block_b = _pick_block_b(B, T, D, d_inner, n_head, weight_bytes, cfg)
    assert B % block_b == 0, "block_b must divide B"
    # bf16 activation slabs have a 16-row sublane tile: when blocking the batch, the block's
    # row count must be a multiple of 16 (whole-batch blocks are always legal).
    assert block_b == B or (block_b * T) % 16 == 0, \
        "block_b * T must be a multiple of 16 when block_b < B"
    n_blocks = B // block_b
    N = block_b * T

    x2 = enc_input.astype(jnp.bfloat16).reshape(B * T, D)      # bf16 activations: half the DMA
    kvalid = key_valid.astype(jnp.float32).reshape(B, 1, T)
    npad = non_pad_mask.astype(jnp.float32).reshape(B * T, 1)

    data_specs = [
        pl.BlockSpec((N, D), lambda i: (i, 0)),                # enc_input slab
        pl.BlockSpec((block_b, 1, T), lambda i: (i, 0, 0)),    # key validity
        pl.BlockSpec((N, 1), lambda i: (i, 0)),                # non-pad multiplier
    ]
    out_spec = pl.BlockSpec((N, D), lambda i: (i, 0))

    def run(single_buffer, exp_in_bf16):
        def wspec(w):
            idx = lambda i, _nd=w.ndim: (0,) * _nd             # grid-invariant: DMA'd once
            if single_buffer:
                # Weights never re-DMA -> single-buffer to halve their VMEM residency.
                return pl.BlockSpec(w.shape, idx, pipeline_mode=pl.Buffered(1))
            return pl.BlockSpec(w.shape, idx)

        kernel = functools.partial(_fft_block_kernel, n_head, d_head, T, block_b, exp_in_bf16)
        out2 = pl.pallas_call(
            kernel,
            out_shape=jax.ShapeDtypeStruct((B * T, D), enc_input.dtype),
            grid_spec=pltpu.PrefetchScalarGridSpec(
                num_scalar_prefetch=0,
                grid=(n_blocks,),
                in_specs=data_specs + [wspec(w) for w in weights],
                out_specs=out_spec,
                scratch_shapes=[pltpu.VMEM((N, D), jnp.bfloat16)],   # merged per-head contexts
            ),
            compiler_params=pltpu.CompilerParams(
                dimension_semantics=("parallel",),
                vmem_limit_bytes=int(cfg["vmem_budget"]),
            ),
        )(x2, kvalid, npad, *weights)
        return jax.block_until_ready(out2)

    # Preferred build first; fall back to progressively more conservative builds so the kernel
    # still compiles on JAX versions without BlockSpec.pipeline_mode or without bf16-exp lowering.
    attempts = list(dict.fromkeys([(True, cfg["exp_in_bf16"]), (True, False), (False, False)]))
    last_err = None
    for single_buffer, exp_in_bf16 in attempts:
        try:
            out2 = run(single_buffer, exp_in_bf16)
            break
        except Exception as err:  # noqa: BLE001 - compatibility fallback
            last_err = err
    else:
        raise last_err
    return out2.reshape(B, T, D)


def fft_block_ref(x, slf_attn_mask, non_pad_mask, params, n_head):
    """Pure-JAX f32 reference mirroring the PyTorch module (eval mode, dense additive mask)."""
    B, T, D = x.shape
    dh = D // n_head

    def lin(v, w, b):
        return v @ w.T + b

    def split_heads(t):
        return t.reshape(B, T, n_head, dh).transpose(0, 2, 1, 3)

    q = split_heads(lin(x, params["wq"], params["bq"]))
    k = split_heads(lin(x, params["wk"], params["bk"]))
    v = split_heads(lin(x, params["wv"], params["bv"]))
    scale = dh ** 0.25
    scores = jnp.einsum("bhqd,bhkd->bhqk", q / scale, k / scale) + slf_attn_mask[:, None, :, :]
    p = jax.nn.softmax(scores, axis=-1)
    ctx = jnp.einsum("bhqk,bhkd->bhqd", p, v).transpose(0, 2, 1, 3).reshape(B, T, D)
    out = lin(ctx, params["wo"], params["bo"]) * non_pad_mask
    h = jax.nn.relu(lin(out, params["w1"], params["b1"]))
    out = lin(h, params["w2"], params["b2"]) * non_pad_mask
    return out


def make_params(key, d_model, d_inner):
    """Deterministic synthetic parameters (shapes follow nn.Linear: (out, in))."""
    ks = jax.random.split(key, 12)
    s = 0.05

    def w(k, o, i):
        return s * jax.random.normal(k, (o, i), jnp.float32)

    def b(k, o):
        return s * jax.random.normal(k, (1, o), jnp.float32)

    return {
        "wq": w(ks[0], d_model, d_model), "bq": b(ks[1], d_model),
        "wk": w(ks[2], d_model, d_model), "bk": b(ks[3], d_model),
        "wv": w(ks[4], d_model, d_model), "bv": b(ks[5], d_model),
        "wo": w(ks[6], d_model, d_model), "bo": b(ks[7], d_model),
        "w1": w(ks[8], d_inner, d_model), "b1": b(ks[9], d_inner),
        "w2": w(ks[10], d_model, d_inner), "b2": b(ks[11], d_model),
    }


if __name__ == "__main__":
    # Small shapes consistent with the module: d_model=32, d_inner=64, n_head=2 (d_k=d_v=16).
    B, T, d_model, d_inner, n_head = 2, 8, 32, 64, 2
    # fft_conv1d_kernel / fft_conv1d_padding are unused by FFTBlock.forward.

    key = jax.random.PRNGKey(0)
    k_p, k_x = jax.random.split(key)
    params = make_params(k_p, d_model, d_inner)
    enc_input = jax.random.normal(k_x, (B, T, d_model), jnp.float32)

    # Padding structure: sequence lengths per batch element.
    lengths = jnp.array([T, 5], dtype=jnp.int32)
    valid = (jnp.arange(T)[None, :] < lengths[:, None]).astype(jnp.float32)   # (B, T)
    non_pad_mask = valid[:, :, None]                                          # (B, T, 1)
    # Dense additive mask only for the reference; the kernel rebuilds it in VMEM from `valid`.
    slf_attn_mask = jnp.where(valid[:, None, :] > 0, 0.0, -1e4).astype(jnp.float32)
    slf_attn_mask = jnp.broadcast_to(slf_attn_mask, (B, T, T))

    out = fft_block(enc_input, valid, non_pad_mask, params, n_head)
    out = jax.block_until_ready(out)

    ref = fft_block_ref(enc_input, slf_attn_mask, non_pad_mask, params, n_head)
    # Loose tolerance: bf16 MXU matmuls with f32 accumulation, (optionally) bf16 exp, folded
    # q/k scale in bf16 weights, and approx reciprocal.  Do not tighten without switching to
    # exact math.
    if not bool(jnp.allclose(out, ref, atol=2e-3, rtol=5e-2)):
        max_err = float(jnp.max(jnp.abs(out - ref)))
        raise AssertionError(
            f"Pallas FFTBlock output mismatch vs JAX reference (max abs err {max_err})")

    # TODO(synk): attn_layer_dropout / ffn_dropout are identity in eval mode; training-mode
    #             stochastic dropout is not implemented.
    # TODO(synk): arbitrary dense (B,T,T) additive attention masks are not supported; the kernel
    #             rebuilds the standard key-padding mask from `key_valid` to avoid O(B*T^2) DMA.
    print("KERNEL_OK")
</pallas_src>

<mosaic_0001>
module attributes {stable_mosaic.version = 11 : i64} {
  func.func @_fft_block_kernel(%arg0: i32, %arg1: memref<16x32xbf16, #tpu.memory_space<vmem>>, %arg2: memref<2x1x8xf32, #tpu.memory_space<vmem>>, %arg3: memref<16x1xf32, #tpu.memory_space<vmem>>, %arg4: memref<2x32x16xbf16, #tpu.memory_space<vmem>>, %arg5: memref<2x1x16xf32, #tpu.memory_space<vmem>>, %arg6: memref<2x32x16xbf16, #tpu.memory_space<vmem>>, %arg7: memref<2x1x16xf32, #tpu.memory_space<vmem>>, %arg8: memref<2x32x16xbf16, #tpu.memory_space<vmem>>, %arg9: memref<2x1x16xf32, #tpu.memory_space<vmem>>, %arg10: memref<32x32xbf16, #tpu.memory_space<vmem>>, %arg11: memref<1x32xf32, #tpu.memory_space<vmem>>, %arg12: memref<32x64xbf16, #tpu.memory_space<vmem>>, %arg13: memref<1x64xf32, #tpu.memory_space<vmem>>, %arg14: memref<64x32xbf16, #tpu.memory_space<vmem>>, %arg15: memref<1x32xf32, #tpu.memory_space<vmem>>, %arg16: memref<16x32xf32, #tpu.memory_space<vmem>>, %arg17: memref<16x32xbf16, #tpu.memory_space<vmem>>) attributes {dimension_semantics = [#tpu.dimension_semantics<parallel>], iteration_bounds = array<i64: 1>, scalar_prefetch = 0 : i64, scratch_operands = 1 : i64, tpu.core_type = #tpu.core_type<tc>, window_params = [{transform_indices = @transform_0, window_bounds = array<i64: 16, 32>}, {transform_indices = @transform_1, window_bounds = array<i64: 2, 1, 8>}, {transform_indices = @transform_2, window_bounds = array<i64: 16, 1>}, {pipeline_mode = #tpu.pipeline_mode<synchronous>, transform_indices = @transform_3, window_bounds = array<i64: 2, 32, 16>}, {pipeline_mode = #tpu.pipeline_mode<synchronous>, transform_indices = @transform_4, window_bounds = array<i64: 2, 1, 16>}, {pipeline_mode = #tpu.pipeline_mode<synchronous>, transform_indices = @transform_5, window_bounds = array<i64: 2, 32, 16>}, {pipeline_mode = #tpu.pipeline_mode<synchronous>, transform_indices = @transform_6, window_bounds = array<i64: 2, 1, 16>}, {pipeline_mode = #tpu.pipeline_mode<synchronous>, transform_indices = @transform_7, window_bounds = array<i64: 2, 32, 16>}, {pipeline_mode = #tpu.pipeline_mode<synchronous>, transform_indices = @transform_8, window_bounds = array<i64: 2, 1, 16>}, {pipeline_mode = #tpu.pipeline_mode<synchronous>, transform_indices = @transform_9, window_bounds = array<i64: 32, 32>}, {pipeline_mode = #tpu.pipeline_mode<synchronous>, transform_indices = @transform_10, window_bounds = array<i64: 1, 32>}, {pipeline_mode = #tpu.pipeline_mode<synchronous>, transform_indices = @transform_11, window_bounds = array<i64: 32, 64>}, {pipeline_mode = #tpu.pipeline_mode<synchronous>, transform_indices = @transform_12, window_bounds = array<i64: 1, 64>}, {pipeline_mode = #tpu.pipeline_mode<synchronous>, transform_indices = @transform_13, window_bounds = array<i64: 64, 32>}, {pipeline_mode = #tpu.pipeline_mode<synchronous>, transform_indices = @transform_14, window_bounds = array<i64: 1, 32>}, {transform_indices = @transform_15, window_bounds = array<i64: 16, 32>}]} {
    %c0 = arith.constant 0 : index
    %c0_0 = arith.constant 0 : index
    %0 = vector.load %arg1[%c0, %c0_0] : memref<16x32xbf16, #tpu.memory_space<vmem>>, vector<16x32xbf16>
    %c0_1 = arith.constant 0 : index
    %c0_2 = arith.constant 0 : index
    %1 = vector.load %arg3[%c0_1, %c0_2] : memref<16x1xf32, #tpu.memory_space<vmem>>, vector<16x1xf32>
    %c0_3 = arith.constant 0 : index
    %c0_4 = arith.constant 0 : index
    %c0_5 = arith.constant 0 : index
    %2 = vector.load %arg2[%c0_3, %c0_4, %c0_5] : memref<2x1x8xf32, #tpu.memory_space<vmem>>, vector<2x1x8xf32>
    %cst = arith.constant 0.000000e+00 : f32
    %3 = vector.broadcast %cst : f32 to vector<2x1x8xf32>
    %4 = arith.cmpf ogt, %2, %3 : vector<2x1x8xf32>
    %cst_6 = arith.constant 0.000000e+00 : f32
    %cst_7 = arith.constant -1.000000e+04 : f32
    %5 = vector.broadcast %cst_6 : f32 to vector<2x1x8xf32>
    %6 = vector.broadcast %cst_7 : f32 to vector<2x1x8xf32>
    %7 = arith.select %4, %5, %6 : vector<2x1x8xi1>, vector<2x1x8xf32>
    %c0_8 = arith.constant 0 : index
    %c0_9 = arith.constant 0 : index
    %c0_10 = arith.constant 0 : index
    %8 = vector.load %arg4[%c0_8, %c0_9, %c0_10] : memref<2x32x16xbf16, #tpu.memory_space<vmem>>, vector<1x32x16xbf16>
    %9 = vector.shape_cast %8 : vector<1x32x16xbf16> to vector<32x16xbf16>
    %cst_11 = arith.constant dense<0.000000e+00> : vector<16x16xf32>
    %10 = tpu.matmul %0, %9, %cst_11 {dimension_numbers = #tpu.dot_dimension_numbers<[1], [0], [0], [1], [0, 0, 1, 1], [], []>} : vector<16x32xbf16>, vector<32x16xbf16>, vector<16x16xf32> -> vector<16x16xf32>
    %c0_12 = arith.constant 0 : index
    %c0_13 = arith.constant 0 : index
    %c0_14 = arith.constant 0 : index
    %11 = vector.load %arg5[%c0_12, %c0_13, %c0_14] : memref<2x1x16xf32, #tpu.memory_space<vmem>>, vector<1x1x16xf32>
    %12 = vector.shape_cast %11 : vector<1x1x16xf32> to vector<1x16xf32>
    %13 = vector.broadcast %12 : vector<1x16xf32> to vector<16x16xf32>
    %14 = arith.addf %10, %13 : vector<16x16xf32>
    %15 = arith.truncf %14 : vector<16x16xf32> to vector<16x16xbf16>
    %c0_15 = arith.constant 0 : index
    %c0_16 = arith.constant 0 : index
    %c0_17 = arith.constant 0 : index
    %16 = vector.load %arg6[%c0_15, %c0_16, %c0_17] : memref<2x32x16xbf16, #tpu.memory_space<vmem>>, vector<1x32x16xbf16>
    %17 = vector.shape_cast %16 : vector<1x32x16xbf16> to vector<32x16xbf16>
    %cst_18 = arith.constant dense<0.000000e+00> : vector<16x16xf32>
    %18 = tpu.matmul %0, %17, %cst_18 {dimension_numbers = #tpu.dot_dimension_numbers<[1], [0], [0], [1], [0, 0, 1, 1], [], []>} : vector<16x32xbf16>, vector<32x16xbf16>, vector<16x16xf32> -> vector<16x16xf32>
    %c0_19 = arith.constant 0 : index
    %c0_20 = arith.constant 0 : index
    %c0_21 = arith.constant 0 : index
    %19 = vector.load %arg7[%c0_19, %c0_20, %c0_21] : memref<2x1x16xf32, #tpu.memory_space<vmem>>, vector<1x1x16xf32>
    %20 = vector.shape_cast %19 : vector<1x1x16xf32> to vector<1x16xf32>
    %21 = vector.broadcast %20 : vector<1x16xf32> to vector<16x16xf32>
    %22 = arith.addf %18, %21 : vector<16x16xf32>
    %23 = arith.truncf %22 : vector<16x16xf32> to vector<16x16xbf16>
    %c0_22 = arith.constant 0 : index
    %c0_23 = arith.constant 0 : index
    %c0_24 = arith.constant 0 : index
    %24 = vector.load %arg8[%c0_22, %c0_23, %c0_24] : memref<2x32x16xbf16, #tpu.memory_space<vmem>>, vector<1x32x16xbf16>
    %25 = vector.shape_cast %24 : vector<1x32x16xbf16> to vector<32x16xbf16>
    %cst_25 = arith.constant dense<0.000000e+00> : vector<16x16xf32>
    %26 = tpu.matmul %0, %25, %cst_25 {dimension_numbers = #tpu.dot_dimension_numbers<[1], [0], [0], [1], [0, 0, 1, 1], [], []>} : vector<16x32xbf16>, vector<32x16xbf16>, vector<16x16xf32> -> vector<16x16xf32>
    %c0_26 = arith.constant 0 : index
    %c0_27 = arith.constant 0 : index
    %c0_28 = arith.constant 0 : index
    %27 = vector.load %arg9[%c0_26, %c0_27, %c0_28] : memref<2x1x16xf32, #tpu.memory_space<vmem>>, vector<1x1x16xf32>
    %28 = vector.shape_cast %27 : vector<1x1x16xf32> to vector<1x16xf32>
    %29 = vector.broadcast %28 : vector<1x16xf32> to vector<16x16xf32>
    %30 = arith.addf %26, %29 : vector<16x16xf32>
    %31 = arith.truncf %30 : vector<16x16xf32> to vector<16x16xbf16>
    %32 = vector.shape_cast %15 : vector<16x16xbf16> to vector<2x8x16xbf16>
    %33 = vector.shape_cast %23 : vector<16x16xbf16> to vector<2x8x16xbf16>
    %34 = vector.shape_cast %31 : vector<16x16xbf16> to vector<2x8x16xbf16>
    "tpu.trace_start"() <{level = 10 : i32, message = "bqe,bke->bqk"}> : () -> ()
    %cst_29 = arith.constant dense<0.000000e+00> : vector<2x8x8xf32>
    %35 = tpu.matmul %32, %33, %cst_29 {dimension_numbers = #tpu.dot_dimension_numbers<[2], [2], [1], [1], [0, 0, 0, 1, 1, 1], [0], [0]>} : vector<2x8x16xbf16>, vector<2x8x16xbf16>, vector<2x8x8xf32> -> vector<2x8x8xf32>
    "tpu.trace_stop"() : () -> ()
    %36 = vector.broadcast %7 : vector<2x1x8xf32> to vector<2x8x8xf32>
    %37 = arith.addf %35, %36 : vector<2x8x8xf32>
    %cst_30 = arith.constant dense<0xFF800000> : vector<2x8xf32>
    %38 = vector.multi_reduction <maximumf>, %37, %cst_30 [2] : vector<2x8x8xf32> to vector<2x8xf32>
    %39 = vector.shape_cast %38 : vector<2x8xf32> to vector<2x8x1xf32>
    %40 = vector.broadcast %39 : vector<2x8x1xf32> to vector<2x8x8xf32>
    %41 = arith.subf %37, %40 : vector<2x8x8xf32>
    %42 = math.exp %41 : vector<2x8x8xf32>
    %cst_31 = arith.constant dense<0.000000e+00> : vector<2x8xf32>
    %43 = vector.multi_reduction <add>, %42, %cst_31 [2] : vector<2x8x8xf32> to vector<2x8xf32>
    %44 = vector.shape_cast %43 : vector<2x8xf32> to vector<2x8x1xf32>
    %45 = arith.truncf %42 : vector<2x8x8xf32> to vector<2x8x8xbf16>
    "tpu.trace_start"() <{level = 10 : i32, message = "bqk,bke->bqe"}> : () -> ()
    %cst_32 = arith.constant dense<0.000000e+00> : vector<2x8x16xf32>
    %46 = tpu.matmul %45, %34, %cst_32 {dimension_numbers = #tpu.dot_dimension_numbers<[2], [1], [1], [2], [0, 0, 0, 1, 1, 2], [0], [0]>} : vector<2x8x8xbf16>, vector<2x8x16xbf16>, vector<2x8x16xf32> -> vector<2x8x16xf32>
    "tpu.trace_stop"() : () -> ()
    %47 = tpu.reciprocal %44 {approx = true} : vector<2x8x1xf32> -> vector<2x8x1xf32>
    %48 = vector.broadcast %47 : vector<2x8x1xf32> to vector<2x8x16xf32>
    %49 = arith.mulf %46, %48 : vector<2x8x16xf32>
    %50 = vector.shape_cast %49 : vector<2x8x16xf32> to vector<16x16xf32>
    %51 = arith.truncf %50 : vector<16x16xf32> to vector<16x16xbf16>
    %c0_33 = arith.constant 0 : index
    %c0_34 = arith.constant 0 : index
    %52 = vector.load %arg17[%c0_33, %c0_34] : memref<16x32xbf16, #tpu.memory_space<vmem>>, vector<16x16xbf16>
    tpu.vector_store %arg17[%c0_33, %c0_34], %51 {strides = array<i32>} : memref<16x32xbf16, #tpu.memory_space<vmem>>, vector<16x16xbf16>,
    %c1 = arith.constant 1 : index
    %c0_35 = arith.constant 0 : index
    %c0_36 = arith.constant 0 : index
    %53 = vector.load %arg4[%c1, %c0_35, %c0_36] : memref<2x32x16xbf16, #tpu.memory_space<vmem>>, vector<1x32x16xbf16>
    %54 = vector.shape_cast %53 : vector<1x32x16xbf16> to vector<32x16xbf16>
    %cst_37 = arith.constant dense<0.000000e+00> : vector<16x16xf32>
    %55 = tpu.matmul %0, %54, %cst_37 {dimension_numbers = #tpu.dot_dimension_numbers<[1], [0], [0], [1], [0, 0, 1, 1], [], []>} : vector<16x32xbf16>, vector<32x16xbf16>, vector<16x16xf32> -> vector<16x16xf32>
    %c1_38 = arith.constant 1 : index
    %c0_39 = arith.constant 0 : index
    %c0_40 = arith.constant 0 : index
    %56 = vector.load %arg5[%c1_38, %c0_39, %c0_40] : memref<2x1x16xf32, #tpu.memory_space<vmem>>, vector<1x1x16xf32>
    %57 = vector.shape_cast %56 : vector<1x1x16xf32> to vector<1x16xf32>
    %58 = vector.broadcast %57 : vector<1x16xf32> to vector<16x16xf32>
    %59 = arith.addf %55, %58 : vector<16x16xf32>
    %60 = arith.truncf %59 : vector<16x16xf32> to vector<16x16xbf16>
    %c1_41 = arith.constant 1 : index
    %c0_42 = arith.constant 0 : index
    %c0_43 = arith.constant 0 : index
    %61 = vector.load %arg6[%c1_41, %c0_42, %c0_43] : memref<2x32x16xbf16, #tpu.memory_space<vmem>>, vector<1x32x16xbf16>
    %62 = vector.shape_cast %61 : vector<1x32x16xbf16> to vector<32x16xbf16>
    %cst_44 = arith.constant dense<0.000000e+00> : vector<16x16xf32>
    %63 = tpu.matmul %0, %62, %cst_44 {dimension_numbers = #tpu.dot_dimension_numbers<[1], [0], [0], [1], [0, 0, 1, 1], [], []>} : vector<16x32xbf16>, vector<32x16xbf16>, vector<16x16xf32> -> vector<16x16xf32>
    %c1_45 = arith.constant 1 : index
    %c0_46 = arith.constant 0 : index
    %c0_47 = arith.constant 0 : index
    %64 = vector.load %arg7[%c1_45, %c0_46, %c0_47] : memref<2x1x16xf32, #tpu.memory_space<vmem>>, vector<1x1x16xf32>
    %65 = vector.shape_cast %64 : vector<1x1x16xf32> to vector<1x16xf32>
    %66 = vector.broadcast %65 : vector<1x16xf32> to vector<16x16xf32>
    %67 = arith.addf %63, %66 : vector<16x16xf32>
    %68 = arith.truncf %67 : vector<16x16xf32> to vector<16x16xbf16>
    %c1_48 = arith.constant 1 : index
    %c0_49 = arith.constant 0 : index
    %c0_50 = arith.constant 0 : index
    %69 = vector.load %arg8[%c1_48, %c0_49, %c0_50] : memref<2x32x16xbf16, #tpu.memory_space<vmem>>, vector<1x32x16xbf16>
    %70 = vector.shape_cast %69 : vector<1x32x16xbf16> to vector<32x16xbf16>
    %cst_51 = arith.constant dense<0.000000e+00> : vector<16x16xf32>
    %71 = tpu.matmul %0, %70, %cst_51 {dimension_numbers = #tpu.dot_dimension_numbers<[1], [0], [0], [1], [0, 0, 1, 1], [], []>} : vector<16x32xbf16>, vector<32x16xbf16>, vector<16x16xf32> -> vector<16x16xf32>
    %c1_52 = arith.constant 1 : index
    %c0_53 = arith.constant 0 : index
    %c0_54 = arith.constant 0 : index
    %72 = vector.load %arg9[%c1_52, %c0_53, %c0_54] : memref<2x1x16xf32, #tpu.memory_space<vmem>>, vector<1x1x16xf32>
    %73 = vector.shape_cast %72 : vector<1x1x16xf32> to vector<1x16xf32>
    %74 = vector.broadcast %73 : vector<1x16xf32> to vector<16x16xf32>
    %75 = arith.addf %71, %74 : vector<16x16xf32>
    %76 = arith.truncf %75 : vector<16x16xf32> to vector<16x16xbf16>
    %77 = vector.shape_cast %60 : vector<16x16xbf16> to vector<2x8x16xbf16>
    %78 = vector.shape_cast %68 : vector<16x16xbf16> to vector<2x8x16xbf16>
    %79 = vector.shape_cast %76 : vector<16x16xbf16> to vector<2x8x16xbf16>
    "tpu.trace_start"() <{level = 10 : i32, message = "bqe,bke->bqk"}> : () -> ()
    %cst_55 = arith.constant dense<0.000000e+00> : vector<2x8x8xf32>
    %80 = tpu.matmul %77, %78, %cst_55 {dimension_numbers = #tpu.dot_dimension_numbers<[2], [2], [1], [1], [0, 0, 0, 1, 1, 1], [0], [0]>} : vector<2x8x16xbf16>, vector<2x8x16xbf16>, vector<2x8x8xf32> -> vector<2x8x8xf32>
    "tpu.trace_stop"() : () -> ()
    %81 = vector.broadcast %7 : vector<2x1x8xf32> to vector<2x8x8xf32>
    %82 = arith.addf %80, %81 : vector<2x8x8xf32>
    %cst_56 = arith.constant dense<0xFF800000> : vector<2x8xf32>
    %83 = vector.multi_reduction <maximumf>, %82, %cst_56 [2] : vector<2x8x8xf32> to vector<2x8xf32>
    %84 = vector.shape_cast %83 : vector<2x8xf32> to vector<2x8x1xf32>
    %85 = vector.broadcast %84 : vector<2x8x1xf32> to vector<2x8x8xf32>
    %86 = arith.subf %82, %85 : vector<2x8x8xf32>
    %87 = math.exp %86 : vector<2x8x8xf32>
    %cst_57 = arith.constant dense<0.000000e+00> : vector<2x8xf32>
    %88 = vector.multi_reduction <add>, %87, %cst_57 [2] : vector<2x8x8xf32> to vector<2x8xf32>
    %89 = vector.shape_cast %88 : vector<2x8xf32> to vector<2x8x1xf32>
    %90 = arith.truncf %87 : vector<2x8x8xf32> to vector<2x8x8xbf16>
    "tpu.trace_start"() <{level = 10 : i32, message = "bqk,bke->bqe"}> : () -> ()
    %cst_58 = arith.constant dense<0.000000e+00> : vector<2x8x16xf32>
    %91 = tpu.matmul %90, %79, %cst_58 {dimension_numbers = #tpu.dot_dimension_numbers<[2], [1], [1], [2], [0, 0, 0, 1, 1, 2], [0], [0]>} : vector<2x8x8xbf16>, vector<2x8x16xbf16>, vector<2x8x16xf32> -> vector<2x8x16xf32>
    "tpu.trace_stop"() : () -> ()
    %92 = tpu.reciprocal %89 {approx = true} : vector<2x8x1xf32> -> vector<2x8x1xf32>
    %93 = vector.broadcast %92 : vector<2x8x1xf32> to vector<2x8x16xf32>
    %94 = arith.mulf %91, %93 : vector<2x8x16xf32>
    %95 = vector.shape_cast %94 : vector<2x8x16xf32> to vector<16x16xf32>
    %96 = arith.truncf %95 : vector<16x16xf32> to vector<16x16xbf16>
    %c0_59 = arith.constant 0 : index
    %c16 = arith.constant 16 : index
    %97 = vector.load %arg17[%c0_59, %c16] : memref<16x32xbf16, #tpu.memory_space<vmem>>, vector<16x16xbf16>
    tpu.vector_store %arg17[%c0_59, %c16], %96 {strides = array<i32>} : memref<16x32xbf16, #tpu.memory_space<vmem>>, vector<16x16xbf16>,
    %c0_60 = arith.constant 0 : index
    %c0_61 = arith.constant 0 : index
    %98 = vector.load %arg17[%c0_60, %c0_61] : memref<16x32xbf16, #tpu.memory_space<vmem>>, vector<16x32xbf16>
    %c0_62 = arith.constant 0 : index
    %c0_63 = arith.constant 0 : index
    %99 = vector.load %arg10[%c0_62, %c0_63] : memref<32x32xbf16, #tpu.memory_space<vmem>>, vector<32x32xbf16>
    %cst_64 = arith.constant dense<0.000000e+00> : vector<16x32xf32>
    %100 = tpu.matmul %98, %99, %cst_64 {dimension_numbers = #tpu.dot_dimension_numbers<[1], [0], [0], [1], [0, 0, 1, 1], [], []>} : vector<16x32xbf16>, vector<32x32xbf16>, vector<16x32xf32> -> vector<16x32xf32>
    %c0_65 = arith.constant 0 : index
    %c0_66 = arith.constant 0 : index
    %101 = vector.load %arg11[%c0_65, %c0_66] : memref<1x32xf32, #tpu.memory_space<vmem>>, vector<1x32xf32>
    %102 = vector.broadcast %101 : vector<1x32xf32> to vector<16x32xf32>
    %103 = arith.addf %100, %102 : vector<16x32xf32>
    %104 = vector.broadcast %1 : vector<16x1xf32> to vector<16x32xf32>
    %105 = arith.mulf %103, %104 : vector<16x32xf32>
    %106 = arith.truncf %105 : vector<16x32xf32> to vector<16x32xbf16>
    %c0_67 = arith.constant 0 : index
    %c0_68 = arith.constant 0 : index
    %107 = vector.load %arg12[%c0_67, %c0_68] : memref<32x64xbf16, #tpu.memory_space<vmem>>, vector<32x64xbf16>
    %cst_69 = arith.constant dense<0.000000e+00> : vector<16x64xf32>
    %108 = tpu.matmul %106, %107, %cst_69 {dimension_numbers = #tpu.dot_dimension_numbers<[1], [0], [0], [1], [0, 0, 1, 1], [], []>} : vector<16x32xbf16>, vector<32x64xbf16>, vector<16x64xf32> -> vector<16x64xf32>
    %c0_70 = arith.constant 0 : index
    %c0_71 = arith.constant 0 : index
    %109 = vector.load %arg13[%c0_70, %c0_71] : memref<1x64xf32, #tpu.memory_space<vmem>>, vector<1x64xf32>
    %110 = vector.broadcast %109 : vector<1x64xf32> to vector<16x64xf32>
    %111 = arith.addf %108, %110 : vector<16x64xf32>
    %cst_72 = arith.constant 0.000000e+00 : f32
    %112 = vector.broadcast %cst_72 : f32 to vector<16x64xf32>
    %113 = arith.maximumf %111, %112 : vector<16x64xf32>
    %114 = arith.truncf %113 : vector<16x64xf32> to vector<16x64xbf16>
    %c0_73 = arith.constant 0 : index
    %c0_74 = arith.constant 0 : index
    %115 = vector.load %arg14[%c0_73, %c0_74] : memref<64x32xbf16, #tpu.memory_space<vmem>>, vector<64x32xbf16>
    %cst_75 = arith.constant dense<0.000000e+00> : vector<16x32xf32>
    %116 = tpu.matmul %114, %115, %cst_75 {dimension_numbers = #tpu.dot_dimension_numbers<[1], [0], [0], [1], [0, 0, 1, 1], [], []>} : vector<16x64xbf16>, vector<64x32xbf16>, vector<16x32xf32> -> vector<16x32xf32>
    %c0_76 = arith.constant 0 : index
    %c0_77 = arith.constant 0 : index
    %117 = vector.load %arg15[%c0_76, %c0_77] : memref<1x32xf32, #tpu.memory_space<vmem>>, vector<1x32xf32>
    %118 = vector.broadcast %117 : vector<1x32xf32> to vector<16x32xf32>
    %119 = arith.addf %116, %118 : vector<16x32xf32>
    %120 = vector.broadcast %1 : vector<16x1xf32> to vector<16x32xf32>
    %121 = arith.mulf %119, %120 : vector<16x32xf32>
    %c0_78 = arith.constant 0 : index
    %c0_79 = arith.constant 0 : index
    %122 = vector.load %arg16[%c0_78, %c0_79] : memref<16x32xf32, #tpu.memory_space<vmem>>, vector<16x32xf32>
    tpu.vector_store %arg16[%c0_78, %c0_79], %121 {strides = array<i32>} : memref<16x32xf32, #tpu.memory_space<vmem>>, vector<16x32xf32>,
    return
  }
  func.func @transform_0(%arg0: i32) -> (i32, i32) {
    %c0_i32 = arith.constant 0 : i32
    %c0_i32_0 = arith.constant 0 : i32
    return %arg0, %c0_i32 : i32, i32
  }
  func.func @transform_1(%arg0: i32) -> (i32, i32, i32) {
    %c0_i32 = arith.constant 0 : i32
    %c0_i32_0 = arith.constant 0 : i32
    %c0_i32_1 = arith.constant 0 : i32
    return %arg0, %c0_i32, %c0_i32_0 : i32, i32, i32
  }
  func.func @transform_2(%arg0: i32) -> (i32, i32) {
    %c0_i32 = arith.constant 0 : i32
    %c0_i32_0 = arith.constant 0 : i32
    return %arg0, %c0_i32 : i32, i32
  }
  func.func @transform_3(%arg0: i32) -> (i32, i32, i32) {
    %c0_i32 = arith.constant 0 : i32
    %c0_i32_0 = arith.constant 0 : i32
    %c0_i32_1 = arith.constant 0 : i32
    %c0_i32_2 = arith.constant 0 : i32
    return %c0_i32, %c0_i32_0, %c0_i32_1 : i32, i32, i32
  }
  func.func @transform_4(%arg0: i32) -> (i32, i32, i32) {
    %c0_i32 = arith.constant 0 : i32
    %c0_i32_0 = arith.constant 0 : i32
    %c0_i32_1 = arith.constant 0 : i32
    %c0_i32_2 = arith.constant 0 : i32
    return %c0_i32, %c0_i32_0, %c0_i32_1 : i32, i32, i32
  }
  func.func @transform_5(%arg0: i32) -> (i32, i32, i32) {
    %c0_i32 = arith.constant 0 : i32
    %c0_i32_0 = arith.constant 0 : i32
    %c0_i32_1 = arith.constant 0 : i32
    %c0_i32_2 = arith.constant 0 : i32
    return %c0_i32, %c0_i32_0, %c0_i32_1 : i32, i32, i32
  }
  func.func @transform_6(%arg0: i32) -> (i32, i32, i32) {
    %c0_i32 = arith.constant 0 : i32
    %c0_i32_0 = arith.constant 0 : i32
    %c0_i32_1 = arith.constant 0 : i32
    %c0_i32_2 = arith.constant 0 : i32
    return %c0_i32, %c0_i32_0, %c0_i32_1 : i32, i32, i32
  }
  func.func @transform_7(%arg0: i32) -> (i32, i32, i32) {
    %c0_i32 = arith.constant 0 : i32
    %c0_i32_0 = arith.constant 0 : i32
    %c0_i32_1 = arith.constant 0 : i32
    %c0_i32_2 = arith.constant 0 : i32
    return %c0_i32, %c0_i32_0, %c0_i32_1 : i32, i32, i32
  }
  func.func @transform_8(%arg0: i32) -> (i32, i32, i32) {
    %c0_i32 = arith.constant 0 : i32
    %c0_i32_0 = arith.constant 0 : i32
    %c0_i32_1 = arith.constant 0 : i32
    %c0_i32_2 = arith.constant 0 : i32
    return %c0_i32, %c0_i32_0, %c0_i32_1 : i32, i32, i32
  }
  func.func @transform_9(%arg0: i32) -> (i32, i32) {
    %c0_i32 = arith.constant 0 : i32
    %c0_i32_0 = arith.constant 0 : i32
    %c0_i32_1 = arith.constant 0 : i32
    return %c0_i32, %c0_i32_0 : i32, i32
  }
  func.func @transform_10(%arg0: i32) -> (i32, i32) {
    %c0_i32 = arith.constant 0 : i32
    %c0_i32_0 = arith.constant 0 : i32
    %c0_i32_1 = arith.constant 0 : i32
    return %c0_i32, %c0_i32_0 : i32, i32
  }
  func.func @transform_11(%arg0: i32) -> (i32, i32) {
    %c0_i32 = arith.constant 0 : i32
    %c0_i32_0 = arith.constant 0 : i32
    %c0_i32_1 = arith.constant 0 : i32
    return %c0_i32, %c0_i32_0 : i32, i32
  }
  func.func @transform_12(%arg0: i32) -> (i32, i32) {
    %c0_i32 = arith.constant 0 : i32
    %c0_i32_0 = arith.constant 0 : i32
    %c0_i32_1 = arith.constant 0 : i32
    return %c0_i32, %c0_i32_0 : i32, i32
  }
  func.func @transform_13(%arg0: i32) -> (i32, i32) {
    %c0_i32 = arith.constant 0 : i32
    %c0_i32_0 = arith.constant 0 : i32
    %c0_i32_1 = arith.constant 0 : i32
    return %c0_i32, %c0_i32_0 : i32, i32
  }
  func.func @transform_14(%arg0: i32) -> (i32, i32) {
    %c0_i32 = arith.constant 0 : i32
    %c0_i32_0 = arith.constant 0 : i32
    %c0_i32_1 = arith.constant 0 : i32
    return %c0_i32, %c0_i32_0 : i32, i32
  }
  func.func @transform_15(%arg0: i32) -> (i32, i32) {
    %c0_i32 = arith.constant 0 : i32
    %c0_i32_0 = arith.constant 0 : i32
    return %arg0, %c0_i32 : i32, i32
  }
}

module attributes {stable_mosaic.version = 11 : i64} {
  func.func @_fft_block_kernel(%arg0: i32, %arg1: memref<16x32xbf16, #tpu.memory_space<vmem>>, %arg2: memref<2x1x8xf32, #tpu.memory_space<vmem>>, %arg3: memref<16x1xf32, #tpu.memory_space<vmem>>, %arg4: memref<2x32x16xbf16, #tpu.memory_space<vmem>>, %arg5: memref<2x1x16xf32, #tpu.memory_space<vmem>>, %arg6: memref<2x32x16xbf16, #tpu.memory_space<vmem>>, %arg7: memref<2x1x16xf32, #tpu.memory_space<vmem>>, %arg8: memref<2x32x16xbf16, #tpu.memory_space<vmem>>, %arg9: memref<2x1x16xf32, #tpu.memory_space<vmem>>, %arg10: memref<32x32xbf16, #tpu.memory_space<vmem>>, %arg11: memref<1x32xf32, #tpu.memory_space<vmem>>, %arg12: memref<32x64xbf16, #tpu.memory_space<vmem>>, %arg13: memref<1x64xf32, #tpu.memory_space<vmem>>, %arg14: memref<64x32xbf16, #tpu.memory_space<vmem>>, %arg15: memref<1x32xf32, #tpu.memory_space<vmem>>, %arg16: memref<16x32xf32, #tpu.memory_space<vmem>>, %arg17: memref<16x32xbf16, #tpu.memory_space<vmem>>) attributes {dimension_semantics = [#tpu.dimension_semantics<parallel>], iteration_bounds = array<i64: 1>, scalar_prefetch = 0 : i64, scratch_operands = 1 : i64, tpu.core_type = #tpu.core_type<tc>, window_params = [{transform_indices = @transform_0, window_bounds = array<i64: 16, 32>}, {transform_indices = @transform_1, window_bounds = array<i64: 2, 1, 8>}, {transform_indices = @transform_2, window_bounds = array<i64: 16, 1>}, {pipeline_mode = #tpu.pipeline_mode<synchronous>, transform_indices = @transform_3, window_bounds = array<i64: 2, 32, 16>}, {pipeline_mode = #tpu.pipeline_mode<synchronous>, transform_indices = @transform_4, window_bounds = array<i64: 2, 1, 16>}, {pipeline_mode = #tpu.pipeline_mode<synchronous>, transform_indices = @transform_5, window_bounds = array<i64: 2, 32, 16>}, {pipeline_mode = #tpu.pipeline_mode<synchronous>, transform_indices = @transform_6, window_bounds = array<i64: 2, 1, 16>}, {pipeline_mode = #tpu.pipeline_mode<synchronous>, transform_indices = @transform_7, window_bounds = array<i64: 2, 32, 16>}, {pipeline_mode = #tpu.pipeline_mode<synchronous>, transform_indices = @transform_8, window_bounds = array<i64: 2, 1, 16>}, {pipeline_mode = #tpu.pipeline_mode<synchronous>, transform_indices = @transform_9, window_bounds = array<i64: 32, 32>}, {pipeline_mode = #tpu.pipeline_mode<synchronous>, transform_indices = @transform_10, window_bounds = array<i64: 1, 32>}, {pipeline_mode = #tpu.pipeline_mode<synchronous>, transform_indices = @transform_11, window_bounds = array<i64: 32, 64>}, {pipeline_mode = #tpu.pipeline_mode<synchronous>, transform_indices = @transform_12, window_bounds = array<i64: 1, 64>}, {pipeline_mode = #tpu.pipeline_mode<synchronous>, transform_indices = @transform_13, window_bounds = array<i64: 64, 32>}, {pipeline_mode = #tpu.pipeline_mode<synchronous>, transform_indices = @transform_14, window_bounds = array<i64: 1, 32>}, {transform_indices = @transform_15, window_bounds = array<i64: 16, 32>}]} {
    %c0 = arith.constant 0 : index
    %c0_0 = arith.constant 0 : index
    %0 = vector.load %arg1[%c0, %c0_0] : memref<16x32xbf16, #tpu.memory_space<vmem>>, vector<16x32xbf16>
    %c0_1 = arith.constant 0 : index
    %c0_2 = arith.constant 0 : index
    %1 = vector.load %arg3[%c0_1, %c0_2] : memref<16x1xf32, #tpu.memory_space<vmem>>, vector<16x1xf32>
    %c0_3 = arith.constant 0 : index
    %c0_4 = arith.constant 0 : index
    %c0_5 = arith.constant 0 : index
    %2 = vector.load %arg2[%c0_3, %c0_4, %c0_5] : memref<2x1x8xf32, #tpu.memory_space<vmem>>, vector<2x1x8xf32>
    %cst = arith.constant 0.000000e+00 : f32
    %3 = vector.broadcast %cst : f32 to vector<2x1x8xf32>
    %4 = arith.cmpf ogt, %2, %3 : vector<2x1x8xf32>
    %cst_6 = arith.constant 0.000000e+00 : f32
    %cst_7 = arith.constant -1.000000e+04 : f32
    %5 = vector.broadcast %cst_6 : f32 to vector<2x1x8xf32>
    %6 = vector.broadcast %cst_7 : f32 to vector<2x1x8xf32>
    %7 = arith.select %4, %5, %6 : vector<2x1x8xi1>, vector<2x1x8xf32>
    %c0_8 = arith.constant 0 : index
    %c0_9 = arith.constant 0 : index
    %c0_10 = arith.constant 0 : index
    %8 = vector.load %arg4[%c0_8, %c0_9, %c0_10] : memref<2x32x16xbf16, #tpu.memory_space<vmem>>, vector<1x32x16xbf16>
    %9 = vector.shape_cast %8 : vector<1x32x16xbf16> to vector<32x16xbf16>
    %cst_11 = arith.constant dense<0.000000e+00> : vector<16x16xf32>
    %10 = tpu.matmul %0, %9, %cst_11 {dimension_numbers = #tpu.dot_dimension_numbers<[1], [0], [0], [1], [0, 0, 1, 1], [], []>} : vector<16x32xbf16>, vector<32x16xbf16>, vector<16x16xf32> -> vector<16x16xf32>
    %c0_12 = arith.constant 0 : index
    %c0_13 = arith.constant 0 : index
    %c0_14 = arith.constant 0 : index
    %11 = vector.load %arg5[%c0_12, %c0_13, %c0_14] : memref<2x1x16xf32, #tpu.memory_space<vmem>>, vector<1x1x16xf32>
    %12 = vector.shape_cast %11 : vector<1x1x16xf32> to vector<1x16xf32>
    %13 = vector.broadcast %12 : vector<1x16xf32> to vector<16x16xf32>
    %14 = arith.addf %10, %13 : vector<16x16xf32>
    %15 = arith.truncf %14 : vector<16x16xf32> to vector<16x16xbf16>
    %c0_15 = arith.constant 0 : index
    %c0_16 = arith.constant 0 : index
    %c0_17 = arith.constant 0 : index
    %16 = vector.load %arg6[%c0_15, %c0_16, %c0_17] : memref<2x32x16xbf16, #tpu.memory_space<vmem>>, vector<1x32x16xbf16>
    %17 = vector.shape_cast %16 : vector<1x32x16xbf16> to vector<32x16xbf16>
    %cst_18 = arith.constant dense<0.000000e+00> : vector<16x16xf32>
    %18 = tpu.matmul %0, %17, %cst_18 {dimension_numbers = #tpu.dot_dimension_numbers<[1], [0], [0], [1], [0, 0, 1, 1], [], []>} : vector<16x32xbf16>, vector<32x16xbf16>, vector<16x16xf32> -> vector<16x16xf32>
    %c0_19 = arith.constant 0 : index
    %c0_20 = arith.constant 0 : index
    %c0_21 = arith.constant 0 : index
    %19 = vector.load %arg7[%c0_19, %c0_20, %c0_21] : memref<2x1x16xf32, #tpu.memory_space<vmem>>, vector<1x1x16xf32>
    %20 = vector.shape_cast %19 : vector<1x1x16xf32> to vector<1x16xf32>
    %21 = vector.broadcast %20 : vector<1x16xf32> to vector<16x16xf32>
    %22 = arith.addf %18, %21 : vector<16x16xf32>
    %23 = arith.truncf %22 : vector<16x16xf32> to vector<16x16xbf16>
    %c0_22 = arith.constant 0 : index
    %c0_23 = arith.constant 0 : index
    %c0_24 = arith.constant 0 : index
    %24 = vector.load %arg8[%c0_22, %c0_23, %c0_24] : memref<2x32x16xbf16, #tpu.memory_space<vmem>>, vector<1x32x16xbf16>
    %25 = vector.shape_cast %24 : vector<1x32x16xbf16> to vector<32x16xbf16>
    %cst_25 = arith.constant dense<0.000000e+00> : vector<16x16xf32>
    %26 = tpu.matmul %0, %25, %cst_25 {dimension_numbers = #tpu.dot_dimension_numbers<[1], [0], [0], [1], [0, 0, 1, 1], [], []>} : vector<16x32xbf16>, vector<32x16xbf16>, vector<16x16xf32> -> vector<16x16xf32>
    %c0_26 = arith.constant 0 : index
    %c0_27 = arith.constant 0 : index
    %c0_28 = arith.constant 0 : index
    %27 = vector.load %arg9[%c0_26, %c0_27, %c0_28] : memref<2x1x16xf32, #tpu.memory_space<vmem>>, vector<1x1x16xf32>
    %28 = vector.shape_cast %27 : vector<1x1x16xf32> to vector<1x16xf32>
    %29 = vector.broadcast %28 : vector<1x16xf32> to vector<16x16xf32>
    %30 = arith.addf %26, %29 : vector<16x16xf32>
    %31 = arith.truncf %30 : vector<16x16xf32> to vector<16x16xbf16>
    %32 = vector.shape_cast %15 : vector<16x16xbf16> to vector<2x8x16xbf16>
    %33 = vector.shape_cast %23 : vector<16x16xbf16> to vector<2x8x16xbf16>
    %34 = vector.shape_cast %31 : vector<16x16xbf16> to vector<2x8x16xbf16>
    "tpu.trace_start"() <{level = 10 : i32, message = "bqe,bke->bqk"}> : () -> ()
    %cst_29 = arith.constant dense<0.000000e+00> : vector<2x8x8xf32>
    %35 = tpu.matmul %32, %33, %cst_29 {dimension_numbers = #tpu.dot_dimension_numbers<[2], [2], [1], [1], [0, 0, 0, 1, 1, 1], [0], [0]>} : vector<2x8x16xbf16>, vector<2x8x16xbf16>, vector<2x8x8xf32> -> vector<2x8x8xf32>
    "tpu.trace_stop"() : () -> ()
    %36 = vector.broadcast %7 : vector<2x1x8xf32> to vector<2x8x8xf32>
    %37 = arith.addf %35, %36 : vector<2x8x8xf32>
    %cst_30 = arith.constant dense<0xFF800000> : vector<2x8xf32>
    %38 = vector.multi_reduction <maximumf>, %37, %cst_30 [2] : vector<2x8x8xf32> to vector<2x8xf32>
    %39 = vector.shape_cast %38 : vector<2x8xf32> to vector<2x8x1xf32>
    %40 = vector.broadcast %39 : vector<2x8x1xf32> to vector<2x8x8xf32>
    %41 = arith.subf %37, %40 : vector<2x8x8xf32>
    %42 = math.exp %41 : vector<2x8x8xf32>
    %cst_31 = arith.constant dense<0.000000e+00> : vector<2x8xf32>
    %43 = vector.multi_reduction <add>, %42, %cst_31 [2] : vector<2x8x8xf32> to vector<2x8xf32>
    %44 = vector.shape_cast %43 : vector<2x8xf32> to vector<2x8x1xf32>
    %45 = arith.truncf %42 : vector<2x8x8xf32> to vector<2x8x8xbf16>
    "tpu.trace_start"() <{level = 10 : i32, message = "bqk,bke->bqe"}> : () -> ()
    %cst_32 = arith.constant dense<0.000000e+00> : vector<2x8x16xf32>
    %46 = tpu.matmul %45, %34, %cst_32 {dimension_numbers = #tpu.dot_dimension_numbers<[2], [1], [1], [2], [0, 0, 0, 1, 1, 2], [0], [0]>} : vector<2x8x8xbf16>, vector<2x8x16xbf16>, vector<2x8x16xf32> -> vector<2x8x16xf32>
    "tpu.trace_stop"() : () -> ()
    %47 = tpu.reciprocal %44 {approx = true} : vector<2x8x1xf32> -> vector<2x8x1xf32>
    %48 = vector.broadcast %47 : vector<2x8x1xf32> to vector<2x8x16xf32>
    %49 = arith.mulf %46, %48 : vector<2x8x16xf32>
    %50 = vector.shape_cast %49 : vector<2x8x16xf32> to vector<16x16xf32>
    %51 = arith.truncf %50 : vector<16x16xf32> to vector<16x16xbf16>
    %c0_33 = arith.constant 0 : index
    %c0_34 = arith.constant 0 : index
    %52 = vector.load %arg17[%c0_33, %c0_34] : memref<16x32xbf16, #tpu.memory_space<vmem>>, vector<16x16xbf16>
    tpu.vector_store %arg17[%c0_33, %c0_34], %51 {strides = array<i32>} : memref<16x32xbf16, #tpu.memory_space<vmem>>, vector<16x16xbf16>,
    %c1 = arith.constant 1 : index
    %c0_35 = arith.constant 0 : index
    %c0_36 = arith.constant 0 : index
    %53 = vector.load %arg4[%c1, %c0_35, %c0_36] : memref<2x32x16xbf16, #tpu.memory_space<vmem>>, vector<1x32x16xbf16>
    %54 = vector.shape_cast %53 : vector<1x32x16xbf16> to vector<32x16xbf16>
    %cst_37 = arith.constant dense<0.000000e+00> : vector<16x16xf32>
    %55 = tpu.matmul %0, %54, %cst_37 {dimension_numbers = #tpu.dot_dimension_numbers<[1], [0], [0], [1], [0, 0, 1, 1], [], []>} : vector<16x32xbf16>, vector<32x16xbf16>, vector<16x16xf32> -> vector<16x16xf32>
    %c1_38 = arith.constant 1 : index
    %c0_39 = arith.constant 0 : index
    %c0_40 = arith.constant 0 : index
    %56 = vector.load %arg5[%c1_38, %c0_39, %c0_40] : memref<2x1x16xf32, #tpu.memory_space<vmem>>, vector<1x1x16xf32>
    %57 = vector.shape_cast %56 : vector<1x1x16xf32> to vector<1x16xf32>
    %58 = vector.broadcast %57 : vector<1x16xf32> to vector<16x16xf32>
    %59 = arith.addf %55, %58 : vector<16x16xf32>
    %60 = arith.truncf %59 : vector<16x16xf32> to vector<16x16xbf16>
    %c1_41 = arith.constant 1 : index
    %c0_42 = arith.constant 0 : index
    %c0_43 = arith.constant 0 : index
    %61 = vector.load %arg6[%c1_41, %c0_42, %c0_43] : memref<2x32x16xbf16, #tpu.memory_space<vmem>>, vector<1x32x16xbf16>
    %62 = vector.shape_cast %61 : vector<1x32x16xbf16> to vector<32x16xbf16>
    %cst_44 = arith.constant dense<0.000000e+00> : vector<16x16xf32>
    %63 = tpu.matmul %0, %62, %cst_44 {dimension_numbers = #tpu.dot_dimension_numbers<[1], [0], [0], [1], [0, 0, 1, 1], [], []>} : vector<16x32xbf16>, vector<32x16xbf16>, vector<16x16xf32> -> vector<16x16xf32>
    %c1_45 = arith.constant 1 : index
    %c0_46 = arith.constant 0 : index
    %c0_47 = arith.constant 0 : index
    %64 = vector.load %arg7[%c1_45, %c0_46, %c0_47] : memref<2x1x16xf32, #tpu.memory_space<vmem>>, vector<1x1x16xf32>
    %65 = vector.shape_cast %64 : vector<1x1x16xf32> to vector<1x16xf32>
    %66 = vector.broadcast %65 : vector<1x16xf32> to vector<16x16xf32>
    %67 = arith.addf %63, %66 : vector<16x16xf32>
    %68 = arith.truncf %67 : vector<16x16xf32> to vector<16x16xbf16>
    %c1_48 = arith.constant 1 : index
    %c0_49 = arith.constant 0 : index
    %c0_50 = arith.constant 0 : index
    %69 = vector.load %arg8[%c1_48, %c0_49, %c0_50] : memref<2x32x16xbf16, #tpu.memory_space<vmem>>, vector<1x32x16xbf16>
    %70 = vector.shape_cast %69 : vector<1x32x16xbf16> to vector<32x16xbf16>
    %cst_51 = arith.constant dense<0.000000e+00> : vector<16x16xf32>
    %71 = tpu.matmul %0, %70, %cst_51 {dimension_numbers = #tpu.dot_dimension_numbers<[1], [0], [0], [1], [0, 0, 1, 1], [], []>} : vector<16x32xbf16>, vector<32x16xbf16>, vector<16x16xf32> -> vector<16x16xf32>
    %c1_52 = arith.constant 1 : index
    %c0_53 = arith.constant 0 : index
    %c0_54 = arith.constant 0 : index
    %72 = vector.load %arg9[%c1_52, %c0_53, %c0_54] : memref<2x1x16xf32, #tpu.memory_space<vmem>>, vector<1x1x16xf32>
    %73 = vector.shape_cast %72 : vector<1x1x16xf32> to vector<1x16xf32>
    %74 = vector.broadcast %73 : vector<1x16xf32> to vector<16x16xf32>
    %75 = arith.addf %71, %74 : vector<16x16xf32>
    %76 = arith.truncf %75 : vector<16x16xf32> to vector<16x16xbf16>
    %77 = vector.shape_cast %60 : vector<16x16xbf16> to vector<2x8x16xbf16>
    %78 = vector.shape_cast %68 : vector<16x16xbf16> to vector<2x8x16xbf16>
    %79 = vector.shape_cast %76 : vector<16x16xbf16> to vector<2x8x16xbf16>
    "tpu.trace_start"() <{level = 10 : i32, message = "bqe,bke->bqk"}> : () -> ()
    %cst_55 = arith.constant dense<0.000000e+00> : vector<2x8x8xf32>
    %80 = tpu.matmul %77, %78, %cst_55 {dimension_numbers = #tpu.dot_dimension_numbers<[2], [2], [1], [1], [0, 0, 0, 1, 1, 1], [0], [0]>} : vector<2x8x16xbf16>, vector<2x8x16xbf16>, vector<2x8x8xf32> -> vector<2x8x8xf32>
    "tpu.trace_stop"() : () -> ()
    %81 = vector.broadcast %7 : vector<2x1x8xf32> to vector<2x8x8xf32>
    %82 = arith.addf %80, %81 : vector<2x8x8xf32>
    %cst_56 = arith.constant dense<0xFF800000> : vector<2x8xf32>
    %83 = vector.multi_reduction <maximumf>, %82, %cst_56 [2] : vector<2x8x8xf32> to vector<2x8xf32>
    %84 = vector.shape_cast %83 : vector<2x8xf32> to vector<2x8x1xf32>
    %85 = vector.broadcast %84 : vector<2x8x1xf32> to vector<2x8x8xf32>
    %86 = arith.subf %82, %85 : vector<2x8x8xf32>
    %87 = math.exp %86 : vector<2x8x8xf32>
    %cst_57 = arith.constant dense<0.000000e+00> : vector<2x8xf32>
    %88 = vector.multi_reduction <add>, %87, %cst_57 [2] : vector<2x8x8xf32> to vector<2x8xf32>
    %89 = vector.shape_cast %88 : vector<2x8xf32> to vector<2x8x1xf32>
    %90 = arith.truncf %87 : vector<2x8x8xf32> to vector<2x8x8xbf16>
    "tpu.trace_start"() <{level = 10 : i32, message = "bqk,bke->bqe"}> : () -> ()
    %cst_58 = arith.constant dense<0.000000e+00> : vector<2x8x16xf32>
    %91 = tpu.matmul %90, %79, %cst_58 {dimension_numbers = #tpu.dot_dimension_numbers<[2], [1], [1], [2], [0, 0, 0, 1, 1, 2], [0], [0]>} : vector<2x8x8xbf16>, vector<2x8x16xbf16>, vector<2x8x16xf32> -> vector<2x8x16xf32>
    "tpu.trace_stop"() : () -> ()
    %92 = tpu.reciprocal %89 {approx = true} : vector<2x8x1xf32> -> vector<2x8x1xf32>
    %93 = vector.broadcast %92 : vector<2x8x1xf32> to vector<2x8x16xf32>
    %94 = arith.mulf %91, %93 : vector<2x8x16xf32>
    %95 = vector.shape_cast %94 : vector<2x8x16xf32> to vector<16x16xf32>
    %96 = arith.truncf %95 : vector<16x16xf32> to vector<16x16xbf16>
    %c0_59 = arith.constant 0 : index
    %c16 = arith.constant 16 : index
    %97 = vector.load %arg17[%c0_59, %c16] : memref<16x32xbf16, #tpu.memory_space<vmem>>, vector<16x16xbf16>
    tpu.vector_store %arg17[%c0_59, %c16], %96 {strides = array<i32>} : memref<16x32xbf16, #tpu.memory_space<vmem>>, vector<16x16xbf16>,
    %c0_60 = arith.constant 0 : index
    %c0_61 = arith.constant 0 : index
    %98 = vector.load %arg17[%c0_60, %c0_61] : memref<16x32xbf16, #tpu.memory_space<vmem>>, vector<16x32xbf16>
    %c0_62 = arith.constant 0 : index
    %c0_63 = arith.constant 0 : index
    %99 = vector.load %arg10[%c0_62, %c0_63] : memref<32x32xbf16, #tpu.memory_space<vmem>>, vector<32x32xbf16>
    %cst_64 = arith.constant dense<0.000000e+00> : vector<16x32xf32>
    %100 = tpu.matmul %98, %99, %cst_64 {dimension_numbers = #tpu.dot_dimension_numbers<[1], [0], [0], [1], [0, 0, 1, 1], [], []>} : vector<16x32xbf16>, vector<32x32xbf16>, vector<16x32xf32> -> vector<16x32xf32>
    %c0_65 = arith.constant 0 : index
    %c0_66 = arith.constant 0 : index
    %101 = vector.load %arg11[%c0_65, %c0_66] : memref<1x32xf32, #tpu.memory_space<vmem>>, vector<1x32xf32>
    %102 = vector.broadcast %101 : vector<1x32xf32> to vector<16x32xf32>
    %103 = arith.addf %100, %102 : vector<16x32xf32>
    %104 = vector.broadcast %1 : vector<16x1xf32> to vector<16x32xf32>
    %105 = arith.mulf %103, %104 : vector<16x32xf32>
    %106 = arith.truncf %105 : vector<16x32xf32> to vector<16x32xbf16>
    %c0_67 = arith.constant 0 : index
    %c0_68 = arith.constant 0 : index
    %107 = vector.load %arg12[%c0_67, %c0_68] : memref<32x64xbf16, #tpu.memory_space<vmem>>, vector<32x64xbf16>
    %cst_69 = arith.constant dense<0.000000e+00> : vector<16x64xf32>
    %108 = tpu.matmul %106, %107, %cst_69 {dimension_numbers = #tpu.dot_dimension_numbers<[1], [0], [0], [1], [0, 0, 1, 1], [], []>} : vector<16x32xbf16>, vector<32x64xbf16>, vector<16x64xf32> -> vector<16x64xf32>
    %c0_70 = arith.constant 0 : index
    %c0_71 = arith.constant 0 : index
    %109 = vector.load %arg13[%c0_70, %c0_71] : memref<1x64xf32, #tpu.memory_space<vmem>>, vector<1x64xf32>
    %110 = vector.broadcast %109 : vector<1x64xf32> to vector<16x64xf32>
    %111 = arith.addf %108, %110 : vector<16x64xf32>
    %cst_72 = arith.constant 0.000000e+00 : f32
    %112 = vector.broadcast %cst_72 : f32 to vector<16x64xf32>
    %113 = arith.maximumf %111, %112 : vector<16x64xf32>
    %114 = arith.truncf %113 : vector<16x64xf32> to vector<16x64xbf16>
    %c0_73 = arith.constant 0 : index
    %c0_74 = arith.constant 0 : index
    %115 = vector.load %arg14[%c0_73, %c0_74] : memref<64x32xbf16, #tpu.memory_space<vmem>>, vector<64x32xbf16>
    %cst_75 = arith.constant dense<0.000000e+00> : vector<16x32xf32>
    %116 = tpu.matmul %114, %115, %cst_75 {dimension_numbers = #tpu.dot_dimension_numbers<[1], [0], [0], [1], [0, 0, 1, 1], [], []>} : vector<16x64xbf16>, vector<64x32xbf16>, vector<16x32xf32> -> vector<16x32xf32>
    %c0_76 = arith.constant 0 : index
    %c0_77 = arith.constant 0 : index
    %117 = vector.load %arg15[%c0_76, %c0_77] : memref<1x32xf32, #tpu.memory_space<vmem>>, vector<1x32xf32>
    %118 = vector.broadcast %117 : vector<1x32xf32> to vector<16x32xf32>
    %119 = arith.addf %116, %118 : vector<16x32xf32>
    %120 = vector.broadcast %1 : vector<16x1xf32> to vector<16x32xf32>
    %121 = arith.mulf %119, %120 : vector<16x32xf32>
    %c0_78 = arith.constant 0 : index
    %c0_79 = arith.constant 0 : index
    %122 = vector.load %arg16[%c0_78, %c0_79] : memref<16x32xf32, #tpu.memory_space<vmem>>, vector<16x32xf32>
    tpu.vector_store %arg16[%c0_78, %c0_79], %121 {strides = array<i32>} : memref<16x32xf32, #tpu.memory_space<vmem>>, vector<16x32xf32>,
    return
  }
  func.func @transform_0(%arg0: i32) -> (i32, i32) {
    %c0_i32 = arith.constant 0 : i32
    %c0_i32_0 = arith.constant 0 : i32
    return %arg0, %c0_i32 : i32, i32
  }
  func.func @transform_1(%arg0: i32) -> (i32, i32, i32) {
    %c0_i32 = arith.constant 0 : i32
    %c0_i32_0 = arith.constant 0 : i32
    %c0_i32_1 = arith.constant 0 : i32
    return %arg0, %c0_i32, %c0_i32_0 : i32, i32, i32
  }
  func.func @transform_2(%arg0: i32) -> (i32, i32) {
    %c0_i32 = arith.constant 0 : i32
    %c0_i32_0 = arith.constant 0 : i32
    return %arg0, %c0_i32 : i32, i32
  }
  func.func @transform_3(%arg0: i32) -> (i32, i32, i32) {
    %c0_i32 = arith.constant 0 : i32
    %c0_i32_0 = arith.constant 0 : i32
    %c0_i32_1 = arith.constant 0 : i32
    %c0_i32_2 = arith.constant 0 : i32
    return %c0_i32, %c0_i32_0, %c0_i32_1 : i32, i32, i32
  }
  func.func @transform_4(%arg0: i32) -> (i32, i32, i32) {
    %c0_i32 = arith.constant 0 : i32
    %c0_i32_0 = arith.constant 0 : i32
    %c0_i32_1 = arith.constant 0 : i32
    %c0_i32_2 = arith.constant 0 : i32
    return %c0_i32, %c0_i32_0, %c0_i32_1 : i32, i32, i32
  }
  func.func @transform_5(%arg0: i32) -> (i32, i32, i32) {
    %c0_i32 = arith.constant 0 : i32
    %c0_i32_0 = arith.constant 0 : i32
    %c0_i32_1 = arith.constant 0 : i32
    %c0_i32_2 = arith.constant 0 : i32
    return %c0_i32, %c0_i32_0, %c0_i32_1 : i32, i32, i32
  }
  func.func @transform_6(%arg0: i32) -> (i32, i32, i32) {
    %c0_i32 = arith.constant 0 : i32
    %c0_i32_0 = arith.constant 0 : i32
    %c0_i32_1 = arith.constant 0 : i32
    %c0_i32_2 = arith.constant 0 : i32
    return %c0_i32, %c0_i32_0, %c0_i32_1 : i32, i32, i32
  }
  func.func @transform_7(%arg0: i32) -> (i32, i32, i32) {
    %c0_i32 = arith.constant 0 : i32
    %c0_i32_0 = arith.constant 0 : i32
    %c0_i32_1 = arith.constant 0 : i32
    %c0_i32_2 = arith.constant 0 : i32
    return %c0_i32, %c0_i32_0, %c0_i32_1 : i32, i32, i32
  }
  func.func @transform_8(%arg0: i32) -> (i32, i32, i32) {
    %c0_i32 = arith.constant 0 : i32
    %c0_i32_0 = arith.constant 0 : i32
    %c0_i32_1 = arith.constant 0 : i32
    %c0_i32_2 = arith.constant 0 : i32
    return %c0_i32, %c0_i32_0, %c0_i32_1 : i32, i32, i32
  }
  func.func @transform_9(%arg0: i32) -> (i32, i32) {
    %c0_i32 = arith.constant 0 : i32
    %c0_i32_0 = arith.constant 0 : i32
    %c0_i32_1 = arith.constant 0 : i32
    return %c0_i32, %c0_i32_0 : i32, i32
  }
  func.func @transform_10(%arg0: i32) -> (i32, i32) {
    %c0_i32 = arith.constant 0 : i32
    %c0_i32_0 = arith.constant 0 : i32
    %c0_i32_1 = arith.constant 0 : i32
    return %c0_i32, %c0_i32_0 : i32, i32
  }
  func.func @transform_11(%arg0: i32) -> (i32, i32) {
    %c0_i32 = arith.constant 0 : i32
    %c0_i32_0 = arith.constant 0 : i32
    %c0_i32_1 = arith.constant 0 : i32
    return %c0_i32, %c0_i32_0 : i32, i32
  }
  func.func @transform_12(%arg0: i32) -> (i32, i32) {
    %c0_i32 = arith.constant 0 : i32
    %c0_i32_0 = arith.constant 0 : i32
    %c0_i32_1 = arith.constant 0 : i32
    return %c0_i32, %c0_i32_0 : i32, i32
  }
  func.func @transform_13(%arg0: i32) -> (i32, i32) {
    %c0_i32 = arith.constant 0 : i32
    %c0_i32_0 = arith.constant 0 : i32
    %c0_i32_1 = arith.constant 0 : i32
    return %c0_i32, %c0_i32_0 : i32, i32
  }
  func.func @transform_14(%arg0: i32) -> (i32, i32) {
    %c0_i32 = arith.constant 0 : i32
    %c0_i32_0 = arith.constant 0 : i32
    %c0_i32_1 = arith.constant 0 : i32
    return %c0_i32, %c0_i32_0 : i32, i32
  }
  func.func @transform_15(%arg0: i32) -> (i32, i32) {
    %c0_i32 = arith.constant 0 : i32
    %c0_i32_0 = arith.constant 0 : i32
    return %arg0, %c0_i32 : i32, i32
  }
}

</mosaic_0001>

<bundles_post_ra>
// kernel: tpu_custom_call.1
= control target key start
LH: loop header
LB: loop body
LE: loop exit
PB: predicated region body
PF: predicated region fallthrough
CT: control target
= control target key end

     0   :  { %v1518_v1 = vmov 0.0   ;;  %vm1519_vm0 = vmmov 0   ;;  %vm90_vm1 = vcmask 261120   ;;  %s1849_s0 = inlined_call_operand.vmem [shape: bf16[16,32], index: 0, kind: input, shape index: {}]   ;;  %s1850_s1 = inlined_call_operand.vmem [shape: f32[2,1,8], index: 1, kind: input, shape index: {}]   ;;  %s1851_s2 = inlined_call_operand.vmem [shape: f32[16,1], index: 2, kind: input, shape index: {}]   ;;  %s1852_s3 = inlined_call_operand.vmem [shape: bf16[2,32,16], index: 3, kind: input, shape index: {}]   ;;  %s1853_s4 = inlined_call_operand.vmem [shape: f32[2,1,16], index: 4, kind: input, shape index: {}]   ;;  %s1854_s5 = inlined_call_operand.vmem [shape: bf16[2,32,16], index: 5, kind: input, shape index: {}]   ;;  %s1855_s6 = inlined_call_operand.vmem [shape: f32[2,1,16], index: 6, kind: input, shape index: {}]   ;;  %s1856_s7 = inlined_call_operand.vmem [shape: bf16[2,32,16], index: 7, kind: input, shape index: {}]   ;;  %s1857_s8 = inlined_call_operand.vmem [shape: f32[2,1,16], index: 8, kind: input, shape index: {}]   ;;  %s1858_s9 = inlined_call_operand.vmem [shape: bf16[32,32], index: 9, kind: input, shape index: {}]   ;;  %s1859_s10 = inlined_call_operand.vmem [shape: f32[1,32], index: 10, kind: input, shape index: {}]   ;;  %s1860_s11 = inlined_call_operand.vmem [shape: bf16[32,64], index: 11, kind: input, shape index: {}]   ;;  %s1861_s12 = inlined_call_operand.vmem [shape: f32[1,64], index: 12, kind: input, shape index: {}]   ;;  %s1862_s13 = inlined_call_operand.vmem [shape: bf16[64,32], index: 13, kind: input, shape index: {}]   ;;  %s1863_s14 = inlined_call_operand.vmem [shape: f32[1,32], index: 14, kind: input, shape index: {}]   ;;  %s1864_s15 = inlined_call_operand.hbm [shape: f32[16,32], index: 15, kind: output, shape index: {}]  }
   0x1   :  { %v1457_v0 = vld [vmem:[%s1852_s3] sm:$0xff]   ;;  %1323 = vmatprep.subr.bf16.mxu1 %v1518_v1  ;;  %1339 = vmatprep.subr.bf16.mxu0 %v1518_v1  ;;  %v1458_v2 = vld [vmem:[%s1852_s3 + $0x8] sm:$0xff]  }
   0x2   :  { %1324 = vmatpush3.bf16.msra.mxu1 %v1457_v0  ;;  %1327 = vmatprep.mubr.msk.bf16.mxu1 %vm1519_vm0, %v1518_v1  ;;  %v1622_v3 = vld [vmem:[%s1849_s0] sm:$0xff]   ;;  %v1461_v5 = vld [vmem:[%s1854_s5 + $0x8] sm:$0xff]  }
   0x3   :  { %1325 = vmatprep.subr.bf16.mxu1 %v1518_v1  ;;  %1343 = vmatprep.mubr.msk.bf16.mxu0 %vm1519_vm0, %v1518_v1  ;;  %v1460_v4 = vld [vmem:[%s1854_s5] sm:$0xff]  }
   0x6   :  { %1326 = vmatpush3.bf16.msra.mxu1 %v1458_v2 }
   0x7   :  { %1331 = vmatprep.subr.bf16.mxu1 %v1518_v1 }
   0x9   :  { %1328 = vmatmul.mubr.msk.bf16.vlgmr.msra.gmra.mrb[0].mxu1 %vm90_vm1, %v1622_v3 }
   0xa   :  { %1332 = vmatpush3.bf16.msra.mxu1 %v1460_v4  ;;  %1335 = vmatprep.mubr.msk.bf16.mxu1 %vm1519_vm0, %v1518_v1 }
   0xb   :  { %1333 = vmatprep.subr.bf16.mxu1 %v1518_v1 }
   0xe   :  { %1334 = vmatpush3.bf16.msra.mxu1 %v1461_v5 }
   0xf   :  { %1347 = vmatprep.subr.bf16.mxu1 %v1518_v1 }
  0x10   :  { %20 = vsyncpa [#allocation4], 0  ;;  %v1462_v6 = vld [vmem:[%s1856_s7] sm:$0xff]   ;;  %v1463_v7 = vld [vmem:[%s1856_s7 + $0x8] sm:$0xff]   ;;  %vm293_vm2 = vcmask 130048   ;;  %vm410_vm3 = vcmask 1043456   ;;  %v283_v39 = vlaneseq }
  0x11   :  { %1336 = vmatmul.mubr.msk.bf16.vlgmr.msra.gmra.mrb[4].mxu1 %vm90_vm1, %v1622_v3  ;;  %1340 = vmatpush3.bf16.msra.mxu0 %v1462_v6  ;;  %v1197_v12 = vld [vmem:[%s1855_s6] ss:$0 sm:$0xff]  ;;  %v57_v40 = vld [vmem:[%s1850_s1 + $0x1] sm:$0x1]  ;;  %v1520_v43 = vmov -10000.0   ;;  %vm386_vm6 = vcmask 64512  }
  0x12   :  { %1349 = vmatprep.mubr.msk.bf16.mxu1 %vm1519_vm0, %v1518_v1  ;;  %1341 = vmatprep.subr.bf16.mxu0 %v1518_v1  ;;  %v1192_v20 = vld [vmem:[%s1853_s4] ss:$0 sm:$0xff]  ;;  %v284_v42 = vshrl.u32 %v283_v39, 7  ;;  %vm59_vm4 = vcmp.gt.f32.partialorder %v57_v40, 0.0  ;;  %v1464_v6 = vld [vmem:[%s1854_s5 + $0x10] sm:$0xff]   ;;  %s1522_s27 = smov 16  }
  0x13   :  { %v1201_v28 = vld [vmem:[%s1857_s8] ss:$0 sm:$0xff]  ;;  %v61_v44 = vsel %vm59_vm4, 0.0, %v1520_v43  ;;  %vm935_vm7 = vcmask 261248   ;;  %vm1127_vm8 = vcmask 523264  }
  0x14   :  { %v56_v41 = vld [vmem:[%s1850_s1] sm:$0x1]  ;;  %v285_v45 = vsub.s32 0, %v284_v42  ;;  %v1238_v42 = vld [vmem:[%s1857_s8 + $0x1] ss:$0 sm:$0xff] }
  0x15   :  { %1342 = vmatpush3.bf16.msra.mxu0 %v1463_v7  ;;  %vm58_vm5 = vcmp.gt.f32.partialorder %v56_v41, 0.0 }
  0x16   :  { %1353 = vmatprep.subr.bf16.mxu0 %v1518_v1  ;;  %v60_v46 = vsel %vm58_vm5, 0.0, %v1520_v43  ;;  %v1682_v47 = vrot.slane %v61_v44, %v285_v45 }
  0x17   :  { %v1684_v49 = vrot.slane %v60_v46, %v285_v45 }
  0x18   :  { %1344 = vmatmul.mubr.msk.bf16.vlgmr.msra.gmra.mrb[0].mxu0 %vm90_vm1, %v1622_v3 }
  0x19   :  { %1355 = vmatprep.mubr.msk.bf16.mxu0 %vm1519_vm0, %v1518_v1 }
  0xdc   :  { %v128_v8 = vpop.f32.mrb[0].mxu1 }
  0xdd   :  { %v1329_v9 = vpop.f32.mrb[1].mxu1  ;;  %v129_v23 = vadd.f32 %v1192_v20, %v128_v8 }
  0xde   :  { %v131_v10 = vpop.f32.mrb[2].mxu1  ;;  %v1465_v9 = vld [vmem:[%s1854_s5 + $0x18] sm:$0xff]  }
  0xdf   :  { %v1330_v11 = vpop.f32.mrb[3].mxu1  ;;  %v132_v25 = vadd.f32 %v1192_v20, %v131_v10  ;;  %v1266_v26 = vpack.c.bf16 %v129_v23, %v129_v23  ;;  %v1466_v10 = vld [vmem:[%s1852_s3 + $0x10] sm:$0xff]  }
  0xe1   :  { %v1267_v27 = vpack.c.bf16 %v132_v25, %v132_v25 }
  0xe4   :  { %v193_v13 = vpop.f32.mrb[4].mxu1 }
  0xe5   :  { %v194_v14 = vadd.f32 %v1197_v12, %v193_v13  ;;  %v1337_v15 = vpop.f32.mrb[5].mxu1  ;;  %v1468_v13 = vld [vmem:[%s1856_s7 + $0x10] sm:$0xff]  }
  0xe6   :  { %v196_v16 = vpop.f32.mrb[6].mxu1 }
  0xe7   :  { %v1268_v17 = vpack.c.bf16 %v194_v14, %v194_v14  ;;  %v197_v18 = vadd.f32 %v1197_v12, %v196_v16  ;;  %v1338_v19 = vpop.f32.mrb[7].mxu1  ;;  %v1467_v12 = vld [vmem:[%s1852_s3 + $0x18] sm:$0xff]  }
  0xe8   :  { %v1469_v14 = vld [vmem:[%s1856_s7 + $0x18] sm:$0xff]  }
  0xe9   :  { %v298_v21 = vsel %vm293_vm2, %v1268_v17, 0  ;;  %v1269_v22 = vpack.c.bf16 %v197_v18, %v197_v18 }
  0xea   :  { %1348 = vmatpush3.bf16.xpose.msra.mxu1 %v298_v21 }
  0xeb   :  { %v344_v24 = vsel %vm293_vm2, %v1269_v22, 0  ;;  %1359 = vmatprep.subr.bf16.mxu1 %v1518_v1  ;;  %v258_v29 = vpop.f32.mrb[0].mxu0  ;;  %v1229_v22 = vld [vmem:[%s1855_s6 + $0x1] ss:$0 sm:$0xff] }
  0xec   :  { %1354 = vmatpush3.bf16.xpose.msra.mxu0 %v344_v24  ;;  %v259_v30 = vadd.f32 %v1201_v28, %v258_v29  ;;  %v1345_v31 = vpop.f32.mrb[1].mxu0 }
  0xed   :  { %1365 = vmatprep.subr.bf16.mxu0 %v1518_v1  ;;  %v261_v32 = vpop.f32.mrb[2].mxu0 }
  0xee   :  { %v1270_v33 = vpack.c.bf16 %v259_v30, %v259_v30  ;;  %v262_v34 = vadd.f32 %v1201_v28, %v261_v32  ;;  %v1346_v35 = vpop.f32.mrb[3].mxu0 }
  0xf0   :  { %v412_v36 = vsel %vm410_vm3, %v1270_v33, 0  ;;  %v1271_v37 = vpack.c.bf16 %v262_v34, %v262_v34 }
  0xf1   :  { %1350 = vmatmul.mubr.msk.bf16.vlgmr.msra.gmra.mrb[8].mxu1 %vm293_vm2, %v1266_v26 }
  0xf2   :  { %1361 = vmatprep.mubr.msk.bf16.mxu1 %vm1519_vm0, %v1518_v1  ;;  %1360 = vmatpush3.bf16.msra.mxu1 %v412_v36  ;;  %v458_v38 = vsel %vm410_vm3, %v1271_v37, 0 }
  0xf3   :  { %1356 = vmatmul.mubr.msk.bf16.vlgmr.msra.gmra.mrb[4].mxu0 %vm293_vm2, %v1267_v27  ;;  %1371 = vmatprep.subr.bf16.mxu1 %v1518_v1  ;;  %v1220_v27 = vld [vmem:[%s1853_s4 + $0x1] ss:$0 sm:$0xff] }
  0xf4   :  { %1367 = vmatprep.mubr.msk.bf16.mxu0 %vm1519_vm0, %v1518_v1  ;;  %1366 = vmatpush3.bf16.msra.mxu0 %v458_v38 }
  0xf5   :  { %1379 = vmatprep.subr.bf16.mxu0 %v1518_v1 }
 0x1c4   :  { %v334_v48 = vpop.f32.mrb[8].mxu1 }
 0x1c5   :  { %v1351_v50 = vpop.f32.mrb[9].mxu1  ;;  %v335_v57 = vadd.f32 %v334_v48, %v1684_v49 }
 0x1c6   :  { %v337_v51 = vpop.f32.mrb[10].mxu1  ;;  %v380_v52 = vpop.f32.mrb[4].mxu0 }
 0x1c7   :  { %v381_v53 = vadd.f32 %v380_v52, %v1682_v47  ;;  %v1352_v54 = vpop.f32.mrb[11].mxu1  ;;  %v1357_v55 = vpop.f32.mrb[5].mxu0  ;;  %v387_v60 = vsel %vm386_vm6, %v335_v57, -inf }
 0x1c8   :  { %v383_v56 = vpop.f32.mrb[6].mxu0 }
 0x1c9   :  { %v1358_v58 = vpop.f32.mrb[7].mxu0  ;;  %v390_v59 = vsel %vm386_vm6, %v381_v53, -inf }
 0x1ca   :  { %391 = vmax.xlane.f32.xlu0 %v390_v59 }
 0x1ce   :  { %388 = vmax.xlane.f32.xlu0 %v387_v60 }
 0x257   :  { %v392_v61 = vpop.xlane.xlu0 %391 }
 0x258   :  { %v394_v62 = vsub.f32 %v381_v53, %v392_v61 }
 0x25a   :  { %v397_v63 = vmul.f32 1.442695, %v394_v62 }
 0x25b   :  { %v389_v0 = vpop.xlane.xlu0 %388 }
 0x25c   :  { %1478 = vpow2.f32 %v397_v63  ;;  %v393_v2 = vsub.f32 %v335_v57, %v389_v0 }
 0x25e   :  { %v395_v4 = vmul.f32 1.442695, %v393_v2 }
 0x260   :  { %1480 = vpow2.f32 %v395_v4 }
 0x266   :  { %v1690_v5 = vpop.eup %1478 }
 0x267   :  { %v406_v7 = vpack.c.bf16 %v1690_v5, %v1690_v5 }
 0x269   :  { %1368 = vmatmul.mubr.msk.bf16.vlgmr.msra.gmra.mrb[8].mxu0 %vm386_vm6, %v406_v7 }
 0x26a   :  { %v1698_v8 = vpop.eup %1480  ;;  %1380 = vmatpush3.bf16.msra.mxu0 %v1464_v6  ;;  %1383 = vmatprep.mubr.msk.bf16.mxu0 %vm1519_vm0, %v1518_v1 }
 0x26b   :  { %v405_v11 = vpack.c.bf16 %v1698_v8, %v1698_v8  ;;  %1381 = vmatprep.subr.bf16.mxu0 %v1518_v1 }
 0x26d   :  { %1362 = vmatmul.mubr.msk.bf16.vlgmr.msra.gmra.mrb[12].mxu1 %vm386_vm6, %v405_v11 }
 0x26e   :  { %1382 = vmatpush3.bf16.msra.mxu0 %v1465_v9  ;;  %1372 = vmatpush3.bf16.msra.mxu1 %v1466_v10 }
 0x26f   :  { %1373 = vmatprep.subr.bf16.mxu1 %v1518_v1  ;;  %1375 = vmatprep.mubr.msk.bf16.mxu1 %vm1519_vm0, %v1518_v1 }
 0x270   :  { %1395 = vmatprep.subr.bf16.mxu0 %v1518_v1 }
 0x271   :  { %1384 = vmatmul.mubr.msk.bf16.vlgmr.msra.gmra.mrb[12].mxu0 %vm90_vm1, %v1622_v3 }
 0x272   :  { %1374 = vmatpush3.bf16.msra.mxu1 %v1467_v12  ;;  %1397 = vmatprep.mubr.msk.bf16.mxu0 %vm1519_vm0, %v1518_v1 }
 0x273   :  { %1387 = vmatprep.subr.bf16.mxu1 %v1518_v1 }
 0x275   :  { %1376 = vmatmul.mubr.msk.bf16.vlgmr.msra.gmra.mrb[16].mxu1 %vm90_vm1, %v1622_v3 }
 0x276   :  { %1391 = vmatprep.mubr.msk.bf16.mxu1 %vm1519_vm0, %v1518_v1  ;;  %1388 = vmatpush3.bf16.msra.mxu1 %v1468_v13 }
 0x277   :  { %1389 = vmatprep.subr.bf16.mxu1 %v1518_v1 }
 0x27a   :  { %1390 = vmatpush3.bf16.msra.mxu1 %v1469_v14 }
 0x27b   :  { %1401 = vmatprep.subr.bf16.mxu1 %v1518_v1 }
 0x27d   :  { %1392 = vmatmul.mubr.msk.bf16.vlgmr.msra.gmra.mrb[20].mxu1 %vm90_vm1, %v1622_v3 }
 0x27e   :  { %1403 = vmatprep.mubr.msk.bf16.mxu1 %vm1519_vm0, %v1518_v1 }
 0x33c   :  { %v1740_v15 = vpop.f32.mrb[8].mxu0 }
 0x33d   :  { %v1369_v16 = vpop.f32.mrb[9].mxu0 }
 0x33e   :  { %v497_v17 = vpop.f32.mrb[10].mxu0  ;;  %v399_v16 = vsel %vm386_vm6, %v1698_v8, 0.0 }
 0x33f   :  { %v1370_v18 = vpop.f32.mrb[11].mxu0 }
 0x340   :  { %v1742_v19 = vpop.f32.mrb[12].mxu1 }
 0x341   :  { %v1363_v20 = vpop.f32.mrb[13].mxu1 }
 0x342   :  { %v451_v21 = vpop.f32.mrb[14].mxu1  ;;  %v402_v20 = vsel %vm386_vm6, %v1690_v5, 0.0  ;;  %v1470_v5 = vld [vmem:[%s1858_s9] sm:$0xff]  }
 0x343   :  { %v1364_v23 = vpop.f32.mrb[15].mxu1 }
 0x344   :  { %v632_v24 = vpop.f32.mrb[12].mxu0 }
 0x345   :  { %v633_v25 = vadd.f32 %v1229_v22, %v632_v24  ;;  %v1385_v3 = vpop.f32.mrb[13].mxu0 }
 0x346   :  { %v635_v26 = vpop.f32.mrb[14].mxu0 }
 0x347   :  { %v1274_v28 = vpack.c.bf16 %v633_v25, %v633_v25  ;;  %v636_v29 = vadd.f32 %v1229_v22, %v635_v26  ;;  %v1386_v30 = vpop.f32.mrb[15].mxu0 }
 0x348   :  { %v565_v31 = vpop.f32.mrb[16].mxu1 }
 0x349   :  { %v726_v32 = vsel %vm293_vm2, %v1274_v28, 0  ;;  %v1275_v33 = vpack.c.bf16 %v636_v29, %v636_v29  ;;  %v566_v34 = vadd.f32 %v1220_v27, %v565_v31  ;;  %v1377_v35 = vpop.f32.mrb[17].mxu1  ;;  %v1471_v28 = vld [vmem:[%s1858_s9 + $0x8] sm:$0xff]  }
 0x34a   :  { %1396 = vmatpush3.bf16.xpose.msra.mxu0 %v726_v32  ;;  %v568_v36 = vpop.f32.mrb[18].mxu1 }
 0x34b   :  { %v772_v37 = vsel %vm293_vm2, %v1275_v33, 0  ;;  %v1378_v38 = vpop.f32.mrb[19].mxu1  ;;  %1407 = vmatprep.subr.bf16.mxu0 %v1518_v1  ;;  %v1272_v39 = vpack.c.bf16 %v566_v34, %v566_v34  ;;  %v569_v40 = vadd.f32 %v1220_v27, %v568_v36  ;;  %v54_v34 = vld [vmem:[%s1851_s2] sm:$0xff] }
 0x34c   :  { %1402 = vmatpush3.bf16.xpose.msra.mxu1 %v772_v37  ;;  %v1521_v38 = vmov 0  }
 0x34d   :  { %1413 = vmatprep.subr.bf16.mxu1 %v1518_v1  ;;  %v1273_v41 = vpack.c.bf16 %v569_v40, %v569_v40  ;;  %1455 = vset.pattern.permute.xlu1 %v1521_v38 }
 0x34e   :  { %1456 = vset.pattern.permute.xlu0 %v1521_v38 }
 0x350   :  { %v699_v43 = vpop.f32.mrb[20].mxu1 }
 0x351   :  { %1398 = vmatmul.mubr.msk.bf16.vlgmr.msra.gmra.mrb[16].mxu0 %vm293_vm2, %v1272_v39  ;;  %v700_v44 = vadd.f32 %v1238_v42, %v699_v43  ;;  %v1393_v45 = vpop.f32.mrb[21].mxu1 }
 0x352   :  { %1409 = vmatprep.mubr.msk.bf16.mxu0 %vm1519_vm0, %v1518_v1  ;;  %v702_v46 = vpop.f32.mrb[22].mxu1  ;;  %v1472_v45 = vld [vmem:[%s1860_s11] sm:$0xff]  }
 0x353   :  { %1404 = vmatmul.mubr.msk.bf16.vlgmr.msra.gmra.mrb[24].mxu1 %vm293_vm2, %v1273_v41  ;;  %v1276_v48 = vpack.c.bf16 %v700_v44, %v700_v44  ;;  %v703_v50 = vadd.f32 %v1238_v42, %v702_v46  ;;  %v1394_v51 = vpop.f32.mrb[23].mxu1  ;;  %v55_v42 = vld [vmem:[%s1851_s2 + $0x8] sm:$0xff] }
 0x354   :  { %1415 = vmatprep.mubr.msk.bf16.mxu1 %vm1519_vm0, %v1518_v1  ;;  %v1473_v46 = vld [vmem:[%s1860_s11 + $0x8] sm:$0xff]  }
 0x355   :  { %v838_v52 = vsel %vm410_vm3, %v1276_v48, 0  ;;  %v1277_v53 = vpack.c.bf16 %v703_v50, %v703_v50  ;;  %v1474_v48 = vld [vmem:[%s1862_s13] sm:$0xff]   ;;  %v1475_v50 = vld [vmem:[%s1862_s13 + $0x8] sm:$0xff]  }
 0x356   :  { %1408 = vmatpush3.bf16.msra.mxu0 %v838_v52  ;;  %v1252_v52 = vld [vmem:[%s1859_s10] ss:$0 sm:$0xff] }
 0x357   :  { %v884_v54 = vsel %vm410_vm3, %v1277_v53, 0  ;;  %1419 = vmatprep.subr.bf16.mxu0 %v1518_v1 }
 0x358   :  { %1414 = vmatpush3.bf16.msra.mxu1 %v884_v54 }
 0x359   :  { %1427 = vmatprep.subr.bf16.mxu1 %v1518_v1 }
 0x424   :  { %v762_v55 = vpop.f32.mrb[16].mxu0 }
 0x425   :  { %v763_v56 = vadd.f32 %v762_v55, %v1684_v49  ;;  %v1399_v57 = vpop.f32.mrb[17].mxu0 }
 0x426   :  { %v765_v58 = vpop.f32.mrb[18].mxu0  ;;  %v808_v59 = vpop.f32.mrb[24].mxu1 }
 0x427   :  { %v809_v60 = vadd.f32 %v808_v59, %v1682_v47  ;;  %v1400_v61 = vpop.f32.mrb[19].mxu0  ;;  %v1405_v62 = vpop.f32.mrb[25].mxu1  ;;  %v814_v63 = vsel %vm386_vm6, %v763_v56, -inf }
 0x428   :  { %815 = vmax.xlane.f32.xlu1 %v814_v63  ;;  %v811_v0 = vpop.f32.mrb[26].mxu1  ;;  %v1476_v63 = vld [vmem:[%s1862_s13 + $0x10] sm:$0xff]  }
 0x429   :  { %v1406_v2 = vpop.f32.mrb[27].mxu1  ;;  %v817_v4 = vsel %vm386_vm6, %v809_v60, -inf  ;;  %v1477_v0 = vld [vmem:[%s1862_s13 + $0x18] sm:$0xff]  }
 0x42a   :  { %v1256_v2 = vld [vmem:[%s1861_s12] ss:$0 sm:$0xff]  ;;  %s1523_s12 = smov [#allocation3]  }
 0x42b   :  { %s1181_s13 = sshll.u32 %s1523_s12, 4  ;;  %s1182_s13 = int_to_ptr.vmem [resolvable:$true] %s1181_s13 }
 0x42c   :  { %818 = vmax.xlane.f32.xlu1 %v817_v4  ;;  %s1494_s8 = scalar_lea.vmem %s1182_s13, 256  ;;  %p1499_p1 = scmp.lt.s32.totalorder %s1182_s13, %s1182_s13 }
 0x42d   :  { %p1495_p0 = scmp.ne.s32.totalorder %s1182_s13, %s1494_s8  ;;  %p1500_p2 = scmp.lt.s32.totalorder %s1494_s8, %s1494_s8 }
 0x42f   :  { %p1501_p3 = por %p1500_p2, %p1499_p1 }
 0x431   :  { %p1502_p4 = pnand %p1501_p3, %p1495_p0 }
 0x4b5   :  { %v816_v6 = vpop.xlane.xlu1 %815 }
 0x4b6   :  { %v820_v7 = vsub.f32 %v763_v56, %v816_v6 }
 0x4b8   :  { %v822_v9 = vmul.f32 1.442695, %v820_v7 }
 0x4b9   :  { %v819_v10 = vpop.xlane.xlu1 %818 }
 0x4ba   :  { %1482 = vpow2.f32 %v822_v9  ;;  %v821_v49 = vsub.f32 %v809_v60, %v819_v10 }
 0x4bc   :  { %v824_v11 = vmul.f32 1.442695, %v821_v49 }
 0x4be   :  { %1484 = vpow2.f32 %v824_v11 }
 0x4c4   :  { %v1483_v12 = vpop.eup %1482 }
 0x4c5   :  { %v826_v47 = vsel %vm386_vm6, %v1483_v12, 0.0  ;;  %v832_v13 = vpack.c.bf16 %v1483_v12, %v1483_v12 }
 0x4c6   :  { %827 = vadd.xlane.f32.xlu0 %v826_v47 }
 0x4c7   :  { %1410 = vmatmul.mubr.msk.bf16.vlgmr.msra.gmra.mrb[20].mxu0 %vm386_vm6, %v832_v13 }
 0x4c8   :  { %v1485_v14 = vpop.eup %1484  ;;  %1423 = vmatprep.mubr.msk.bf16.mxu0 %vm1519_vm0, %v1518_v1  ;;  %1420 = vmatpush3.bf16.msra.mxu0 %v1470_v5 }
 0x4c9   :  { %v829_v17 = vsel %vm386_vm6, %v1485_v14, 0.0  ;;  %v833_v18 = vpack.c.bf16 %v1485_v14, %v1485_v14  ;;  %1421 = vmatprep.subr.bf16.mxu0 %v1518_v1 }
 0x4ca   :  { %400 = vadd.xlane.f32.xlu0 %v399_v16  ;;  %830 = vadd.xlane.f32.xlu1 %v829_v17 }
 0x4cb   :  { %1416 = vmatmul.mubr.msk.bf16.vlgmr.msra.gmra.mrb[28].mxu1 %vm386_vm6, %v833_v18 }
 0x4cc   :  { %1431 = vmatprep.mubr.msk.bf16.mxu1 %vm1519_vm0, %v1518_v1  ;;  %1422 = vmatpush3.bf16.msra.mxu0 %v1471_v28 }
 0x4cd   :  { %1435 = vmatprep.subr.bf16.mxu0 %v1518_v1  ;;  %1428 = vmatpush3.bf16.msra.mxu1 %v1472_v45 }
 0x4ce   :  { %403 = vadd.xlane.f32.xlu1 %v402_v20  ;;  %1429 = vmatprep.subr.bf16.mxu1 %v1518_v1 }
 0x4d1   :  { %1430 = vmatpush3.bf16.msra.mxu1 %v1473_v46 }
 0x4df   :  { %1007 = vperm.xlu1 %1455, %v54_v34  }
 0x4e3   :  { %1012 = vperm.xlu1 %1455, %v55_v42  }
 0x553   :  { %v828_v21 = vpop.xlane.xlu0 %827 }
 0x557   :  { %v401_v22 = vpop.xlane.xlu0 %400  ;;  %v831_v23 = vpop.xlane.xlu1 %830 }
 0x558   :  { %1486 = vrcp.f32 %v401_v22 }
 0x55b   :  { %v404_v24 = vpop.xlane.xlu1 %403 }
 0x55c   :  { %1488 = vrcp.f32 %v404_v24 }
 0x55d   :  { %1490 = vrcp.f32 %v828_v21 }
 0x55e   :  { %1492 = vrcp.f32 %v831_v23 }
 0x55f   :  { %v1008_v51 = vpop.permute.xlu1 %1007 }
 0x562   :  { %v1487_v8 = vpop.eup %1486 }
 0x563   :  { %v502_v3 = vmul.f32 %v1487_v8, %v1742_v19  ;;  %v1013_v59 = vpop.permute.xlu1 %1012 }
 0x566   :  { %v1489_v25 = vpop.eup %1488 }
 0x567   :  { %v503_v26 = vmul.f32 %v1489_v25, %v1740_v15  ;;  %v1491_v15 = vpop.eup %1490 }
 0x568   :  { %v1493_v32 = vpop.eup %1492 }
 0x569   :  { %v504_v27 = vpack.c.bf16 %v503_v26, %v502_v3 }
 0x56b   :  { %505 = vst.msk [vmem:[#allocation2] sm:$0xff] %vm293_vm2, %v504_v27 }
 0x59a   :  { %v874_v29 = vpop.f32.mrb[20].mxu0 }
 0x59b   :  { %v1411_v19 = vpop.f32.mrb[21].mxu0  ;;  %v928_v35 = vmul.f32 %v1491_v15, %v874_v29 }
 0x59c   :  { %v877_v30 = vpop.f32.mrb[22].mxu0 }
 0x59d   :  { %v1412_v31 = vpop.f32.mrb[23].mxu0 }
 0x59e   :  { %v920_v33 = vpop.f32.mrb[28].mxu1 }
 0x59f   :  { %v929_v36 = vmul.f32 %v1493_v32, %v920_v33  ;;  %v1417_v37 = vpop.f32.mrb[29].mxu1 }
 0x5a0   :  { %v923_v39 = vpop.f32.mrb[30].mxu1 }
 0x5a1   :  { %v930_v40 = vpack.c.bf16 %v929_v36, %v928_v35  ;;  %v1418_v41 = vpop.f32.mrb[31].mxu1 }
 0x5a3   :  { %932 = vrot.lane.b32.xlu0 %v930_v40, %s1522_s27 }
 0x615   :  { %v933_v43 = vpop.permute.xlu0 %932 }
 0x616   :  { %936 = vst.msk [vmem:[#allocation2] sm:$0xff] %vm935_vm7, %v933_v43 }
 0x61d   :  { %v937_v44 = vld [vmem:[#allocation2] sm:$0xff] }
 0x61e   :  { %1424 = vmatmul.mubr.msk.bf16.vlgmr.msra.gmra.mrb[24].mxu0 %vm90_vm1, %v937_v44 }
 0x61f   :  { %1443 = vmatprep.mubr.msk.bf16.mxu0 %vm1519_vm0, %v1518_v1  ;;  %1436 = vmatpush3.bf16.msra.mxu0 %v1474_v48 }
 0x620   :  { %1437 = vmatprep.subr.bf16.mxu0 %v1518_v1 }
 0x623   :  { %1438 = vmatpush3.bf16.msra.mxu0 %v1475_v50 }
 0x624   :  { %1439 = vmatprep.subr.bf16.mxu0 %v1518_v1 }
 0x627   :  { %1440 = vmatpush3.bf16.msra.mxu0 %v1476_v63 }
 0x628   :  { %1441 = vmatprep.subr.bf16.mxu0 %v1518_v1  ;;  %v1260_v1 = vld [vmem:[%s1863_s14] ss:$0 sm:$0xff] }
 0x62b   :  { %1442 = vmatpush3.bf16.msra.mxu0 %v1477_v0 }
 0x6f1   :  { %v998_v53 = vpop.f32.mrb[24].mxu0 }
 0x6f2   :  { %v999_v54 = vadd.f32 %v1252_v52, %v998_v53  ;;  %v1425_v55 = vpop.f32.mrb[25].mxu0 }
 0x6f3   :  { %v1001_v56 = vpop.f32.mrb[26].mxu0 }
 0x6f4   :  { %v1002_v57 = vadd.f32 %v1252_v52, %v1001_v56  ;;  %v1426_v58 = vpop.f32.mrb[27].mxu0  ;;  %v1015_v60 = vmul.f32 %v1008_v51, %v999_v54 }
 0x6f6   :  { %v1016_v61 = vmul.f32 %v1013_v59, %v1002_v57 }
 0x6f8   :  { %v1017_v62 = vpack.c.bf16 %v1016_v61, %v1015_v60 }
 0x6fa   :  { %1432 = vmatmul.mubr.msk.bf16.vlgmr.msra.gmra.mrb[32].mxu1 %vm90_vm1, %v1017_v62 }
 0x7cd   :  { %v1078_v4 = vpop.f32.mrb[32].mxu1 }
 0x7ce   :  { %v1079_v6 = vadd.f32 %v1256_v2, %v1078_v4  ;;  %v1433_v7 = vpop.f32.mrb[33].mxu1 }
 0x7cf   :  { %v1081_v9 = vpop.f32.mrb[34].mxu1 }
 0x7d0   :  { %v1082_v10 = vadd.f32 %v1256_v2, %v1081_v9  ;;  %v1434_v49 = vpop.f32.mrb[35].mxu1  ;;  %v1085_v11 = vmax.f32 %v1079_v6, 0.0 }
 0x7d2   :  { %v1086_v12 = vmax.f32 %v1082_v10, 0.0 }
 0x7d4   :  { %v1087_v47 = vpack.c.bf16 %v1086_v12, %v1085_v11 }
 0x7d6   :  { %1444 = vmatmul.mubr.msk.bf16.vlgmr.msra.gmra.mrb[28].mxu0 %vm1127_vm8, %v1087_v47 }
 0x8a9   :  { %v1165_v13 = vpop.f32.mrb[28].mxu0 }
 0x8aa   :  { %v1166_v14 = vadd.f32 %v1260_v1, %v1165_v13  ;;  %v1445_v16 = vpop.f32.mrb[29].mxu0 }
 0x8ab   :  { %v1168_v17 = vpop.f32.mrb[30].mxu0 }
 0x8ac   :  { %v1172_v18 = vmul.f32 %v1166_v14, %v1008_v51  ;;  %v1169_v20 = vadd.f32 %v1260_v1, %v1168_v17  ;;  %v1446_v21 = vpop.f32.mrb[31].mxu0 }
 0x8ae   :  { %1174 = vst.msk [vmem:[#allocation3] sm:$0xff] %vm90_vm1, %v1172_v18  ;;  %v1173_v22 = vmul.f32 %v1169_v20, %v1013_v59 }
 0x8b0   :  { %1175 = vst.msk [vmem:[#allocation3 + $0x8] sm:$0xff] %vm90_vm1, %v1173_v22 }
 0x8b1   :  { %1505 = shalt.err (!%p1502_p4)
}
 0x8b2   :  { %s1506_s23 = scalar_lea.hbm %s1864_s15, 256 }
 0x8b3   :  { %p1507_p5 = scmp.ne.s32.totalorder %s1864_s15, %s1506_s23  ;;  %p1510_p6 = scmp.lt.u32.totalorder %s1506_s23, %s1864_s15 }
 0x8b5   :  { %p1512_p7 = pnand %p1510_p6, %p1507_p5 }
 0x8b7   :  { %1515 = shalt.err (!%p1512_p7)
}
 0x8b8   :  { %s1524_s26 = smov 128   ;;  %s1525_s27 = smov 8  }
 0x8b9   :  { %1187 = dma.vmem_to_hbm [thread:$0]  %s1182_s13, 256, %s1864_s15, [#allocation4], %s1524_s26, %s1524_s26, %s1525_s27  }
 0x8ba   :  { %1516 = dma.done.wait [#allocation4], 256  }
 0x8bb   :  { %1517 = vsyncadd [#allocation4], 4294967040 }
 0x8bc   :  { %1191 = vsyncpa [#allocation4], 1 }

// kernel: tpu_custom_call.1
= control target key start
LH: loop header
LB: loop body
LE: loop exit
PB: predicated region body
PF: predicated region fallthrough
CT: control target
= control target key end

     0   :  { %v1518_v1 = vmov 0.0   ;;  %vm1519_vm0 = vmmov 0   ;;  %vm90_vm1 = vcmask 261120   ;;  %s1849_s0 = inlined_call_operand.vmem [shape: bf16[16,32], index: 0, kind: input, shape index: {}]   ;;  %s1850_s1 = inlined_call_operand.vmem [shape: f32[2,1,8], index: 1, kind: input, shape index: {}]   ;;  %s1851_s2 = inlined_call_operand.vmem [shape: f32[16,1], index: 2, kind: input, shape index: {}]   ;;  %s1852_s3 = inlined_call_operand.vmem [shape: bf16[2,32,16], index: 3, kind: input, shape index: {}]   ;;  %s1853_s4 = inlined_call_operand.vmem [shape: f32[2,1,16], index: 4, kind: input, shape index: {}]   ;;  %s1854_s5 = inlined_call_operand.vmem [shape: bf16[2,32,16], index: 5, kind: input, shape index: {}]   ;;  %s1855_s6 = inlined_call_operand.vmem [shape: f32[2,1,16], index: 6, kind: input, shape index: {}]   ;;  %s1856_s7 = inlined_call_operand.vmem [shape: bf16[2,32,16], index: 7, kind: input, shape index: {}]   ;;  %s1857_s8 = inlined_call_operand.vmem [shape: f32[2,1,16], index: 8, kind: input, shape index: {}]   ;;  %s1858_s9 = inlined_call_operand.vmem [shape: bf16[32,32], index: 9, kind: input, shape index: {}]   ;;  %s1859_s10 = inlined_call_operand.vmem [shape: f32[1,32], index: 10, kind: input, shape index: {}]   ;;  %s1860_s11 = inlined_call_operand.vmem [shape: bf16[32,64], index: 11, kind: input, shape index: {}]   ;;  %s1861_s12 = inlined_call_operand.vmem [shape: f32[1,64], index: 12, kind: input, shape index: {}]   ;;  %s1862_s13 = inlined_call_operand.vmem [shape: bf16[64,32], index: 13, kind: input, shape index: {}]   ;;  %s1863_s14 = inlined_call_operand.vmem [shape: f32[1,32], index: 14, kind: input, shape index: {}]   ;;  %s1864_s15 = inlined_call_operand.hbm [shape: f32[16,32], index: 15, kind: output, shape index: {}]  }
   0x1   :  { %v1457_v0 = vld [vmem:[%s1852_s3] sm:$0xff]   ;;  %1323 = vmatprep.subr.bf16.mxu1 %v1518_v1  ;;  %1339 = vmatprep.subr.bf16.mxu0 %v1518_v1  ;;  %v1458_v2 = vld [vmem:[%s1852_s3 + $0x8] sm:$0xff]  }
   0x2   :  { %1324 = vmatpush3.bf16.msra.mxu1 %v1457_v0  ;;  %1327 = vmatprep.mubr.msk.bf16.mxu1 %vm1519_vm0, %v1518_v1  ;;  %v1622_v3 = vld [vmem:[%s1849_s0] sm:$0xff]   ;;  %v1461_v5 = vld [vmem:[%s1854_s5 + $0x8] sm:$0xff]  }
   0x3   :  { %1325 = vmatprep.subr.bf16.mxu1 %v1518_v1  ;;  %1343 = vmatprep.mubr.msk.bf16.mxu0 %vm1519_vm0, %v1518_v1  ;;  %v1460_v4 = vld [vmem:[%s1854_s5] sm:$0xff]  }
   0x6   :  { %1326 = vmatpush3.bf16.msra.mxu1 %v1458_v2 }
   0x7   :  { %1331 = vmatprep.subr.bf16.mxu1 %v1518_v1 }
   0x9   :  { %1328 = vmatmul.mubr.msk.bf16.vlgmr.msra.gmra.mrb[0].mxu1 %vm90_vm1, %v1622_v3 }
   0xa   :  { %1332 = vmatpush3.bf16.msra.mxu1 %v1460_v4  ;;  %1335 = vmatprep.mubr.msk.bf16.mxu1 %vm1519_vm0, %v1518_v1 }
   0xb   :  { %1333 = vmatprep.subr.bf16.mxu1 %v1518_v1 }
   0xe   :  { %1334 = vmatpush3.bf16.msra.mxu1 %v1461_v5 }
   0xf   :  { %1347 = vmatprep.subr.bf16.mxu1 %v1518_v1 }
  0x10   :  { %20 = vsyncpa [#allocation4], 0  ;;  %v1462_v6 = vld [vmem:[%s1856_s7] sm:$0xff]   ;;  %v1463_v7 = vld [vmem:[%s1856_s7 + $0x8] sm:$0xff]   ;;  %vm293_vm2 = vcmask 130048   ;;  %vm410_vm3 = vcmask 1043456   ;;  %v283_v39 = vlaneseq }
  0x11   :  { %1336 = vmatmul.mubr.msk.bf16.vlgmr.msra.gmra.mrb[4].mxu1 %vm90_vm1, %v1622_v3  ;;  %1340 = vmatpush3.bf16.msra.mxu0 %v1462_v6  ;;  %v1197_v12 = vld [vmem:[%s1855_s6] ss:$0 sm:$0xff]  ;;  %v57_v40 = vld [vmem:[%s1850_s1 + $0x1] sm:$0x1]  ;;  %v1520_v43 = vmov -10000.0   ;;  %vm386_vm6 = vcmask 64512  }
  0x12   :  { %1349 = vmatprep.mubr.msk.bf16.mxu1 %vm1519_vm0, %v1518_v1  ;;  %1341 = vmatprep.subr.bf16.mxu0 %v1518_v1  ;;  %v1192_v20 = vld [vmem:[%s1853_s4] ss:$0 sm:$0xff]  ;;  %v284_v42 = vshrl.u32 %v283_v39, 7  ;;  %vm59_vm4 = vcmp.gt.f32.partialorder %v57_v40, 0.0  ;;  %v1464_v6 = vld [vmem:[%s1854_s5 + $0x10] sm:$0xff]   ;;  %s1522_s27 = smov 16  }
  0x13   :  { %v1201_v28 = vld [vmem:[%s1857_s8] ss:$0 sm:$0xff]  ;;  %v61_v44 = vsel %vm59_vm4, 0.0, %v1520_v43  ;;  %vm935_vm7 = vcmask 261248   ;;  %vm1127_vm8 = vcmask 523264  }
  0x14   :  { %v56_v41 = vld [vmem:[%s1850_s1] sm:$0x1]  ;;  %v285_v45 = vsub.s32 0, %v284_v42  ;;  %v1238_v42 = vld [vmem:[%s1857_s8 + $0x1] ss:$0 sm:$0xff] }
  0x15   :  { %1342 = vmatpush3.bf16.msra.mxu0 %v1463_v7  ;;  %vm58_vm5 = vcmp.gt.f32.partialorder %v56_v41, 0.0 }
  0x16   :  { %1353 = vmatprep.subr.bf16.mxu0 %v1518_v1  ;;  %v60_v46 = vsel %vm58_vm5, 0.0, %v1520_v43  ;;  %v1682_v47 = vrot.slane %v61_v44, %v285_v45 }
  0x17   :  { %v1684_v49 = vrot.slane %v60_v46, %v285_v45 }
  0x18   :  { %1344 = vmatmul.mubr.msk.bf16.vlgmr.msra.gmra.mrb[0].mxu0 %vm90_vm1, %v1622_v3 }
  0x19   :  { %1355 = vmatprep.mubr.msk.bf16.mxu0 %vm1519_vm0, %v1518_v1 }
  0xdc   :  { %v128_v8 = vpop.f32.mrb[0].mxu1 }
  0xdd   :  { %v1329_v9 = vpop.f32.mrb[1].mxu1  ;;  %v129_v23 = vadd.f32 %v1192_v20, %v128_v8 }
  0xde   :  { %v131_v10 = vpop.f32.mrb[2].mxu1  ;;  %v1465_v9 = vld [vmem:[%s1854_s5 + $0x18] sm:$0xff]  }
  0xdf   :  { %v1330_v11 = vpop.f32.mrb[3].mxu1  ;;  %v132_v25 = vadd.f32 %v1192_v20, %v131_v10  ;;  %v1266_v26 = vpack.c.bf16 %v129_v23, %v129_v23  ;;  %v1466_v10 = vld [vmem:[%s1852_s3 + $0x10] sm:$0xff]  }
  0xe1   :  { %v1267_v27 = vpack.c.bf16 %v132_v25, %v132_v25 }
  0xe4   :  { %v193_v13 = vpop.f32.mrb[4].mxu1 }
  0xe5   :  { %v194_v14 = vadd.f32 %v1197_v12, %v193_v13  ;;  %v1337_v15 = vpop.f32.mrb[5].mxu1  ;;  %v1468_v13 = vld [vmem:[%s1856_s7 + $0x10] sm:$0xff]  }
  0xe6   :  { %v196_v16 = vpop.f32.mrb[6].mxu1 }
  0xe7   :  { %v1268_v17 = vpack.c.bf16 %v194_v14, %v194_v14  ;;  %v197_v18 = vadd.f32 %v1197_v12, %v196_v16  ;;  %v1338_v19 = vpop.f32.mrb[7].mxu1  ;;  %v1467_v12 = vld [vmem:[%s1852_s3 + $0x18] sm:$0xff]  }
  0xe8   :  { %v1469_v14 = vld [vmem:[%s1856_s7 + $0x18] sm:$0xff]  }
  0xe9   :  { %v298_v21 = vsel %vm293_vm2, %v1268_v17, 0  ;;  %v1269_v22 = vpack.c.bf16 %v197_v18, %v197_v18 }
  0xea   :  { %1348 = vmatpush3.bf16.xpose.msra.mxu1 %v298_v21 }
  0xeb   :  { %v344_v24 = vsel %vm293_vm2, %v1269_v22, 0  ;;  %1359 = vmatprep.subr.bf16.mxu1 %v1518_v1  ;;  %v258_v29 = vpop.f32.mrb[0].mxu0  ;;  %v1229_v22 = vld [vmem:[%s1855_s6 + $0x1] ss:$0 sm:$0xff] }
  0xec   :  { %1354 = vmatpush3.bf16.xpose.msra.mxu0 %v344_v24  ;;  %v259_v30 = vadd.f32 %v1201_v28, %v258_v29  ;;  %v1345_v31 = vpop.f32.mrb[1].mxu0 }
  0xed   :  { %1365 = vmatprep.subr.bf16.mxu0 %v1518_v1  ;;  %v261_v32 = vpop.f32.mrb[2].mxu0 }
  0xee   :  { %v1270_v33 = vpack.c.bf16 %v259_v30, %v259_v30  ;;  %v262_v34 = vadd.f32 %v1201_v28, %v261_v32  ;;  %v1346_v35 = vpop.f32.mrb[3].mxu0 }
  0xf0   :  { %v412_v36 = vsel %vm410_vm3, %v1270_v33, 0  ;;  %v1271_v37 = vpack.c.bf16 %v262_v34, %v262_v34 }
  0xf1   :  { %1350 = vmatmul.mubr.msk.bf16.vlgmr.msra.gmra.mrb[8].mxu1 %vm293_vm2, %v1266_v26 }
  0xf2   :  { %1361 = vmatprep.mubr.msk.bf16.mxu1 %vm1519_vm0, %v1518_v1  ;;  %1360 = vmatpush3.bf16.msra.mxu1 %v412_v36  ;;  %v458_v38 = vsel %vm410_vm3, %v1271_v37, 0 }
  0xf3   :  { %1356 = vmatmul.mubr.msk.bf16.vlgmr.msra.gmra.mrb[4].mxu0 %vm293_vm2, %v1267_v27  ;;  %1371 = vmatprep.subr.bf16.mxu1 %v1518_v1  ;;  %v1220_v27 = vld [vmem:[%s1853_s4 + $0x1] ss:$0 sm:$0xff] }
  0xf4   :  { %1367 = vmatprep.mubr.msk.bf16.mxu0 %vm1519_vm0, %v1518_v1  ;;  %1366 = vmatpush3.bf16.msra.mxu0 %v458_v38 }
  0xf5   :  { %1379 = vmatprep.subr.bf16.mxu0 %v1518_v1 }
 0x1c4   :  { %v334_v48 = vpop.f32.mrb[8].mxu1 }
 0x1c5   :  { %v1351_v50 = vpop.f32.mrb[9].mxu1  ;;  %v335_v57 = vadd.f32 %v334_v48, %v1684_v49 }
 0x1c6   :  { %v337_v51 = vpop.f32.mrb[10].mxu1  ;;  %v380_v52 = vpop.f32.mrb[4].mxu0 }
 0x1c7   :  { %v381_v53 = vadd.f32 %v380_v52, %v1682_v47  ;;  %v1352_v54 = vpop.f32.mrb[11].mxu1  ;;  %v1357_v55 = vpop.f32.mrb[5].mxu0  ;;  %v387_v60 = vsel %vm386_vm6, %v335_v57, -inf }
 0x1c8   :  { %v383_v56 = vpop.f32.mrb[6].mxu0 }
 0x1c9   :  { %v1358_v58 = vpop.f32.mrb[7].mxu0  ;;  %v390_v59 = vsel %vm386_vm6, %v381_v53, -inf }
 0x1ca   :  { %391 = vmax.xlane.f32.xlu0 %v390_v59 }
 0x1ce   :  { %388 = vmax.xlane.f32.xlu0 %v387_v60 }
 0x257   :  { %v392_v61 = vpop.xlane.xlu0 %391 }
 0x258   :  { %v394_v62 = vsub.f32 %v381_v53, %v392_v61 }
 0x25a   :  { %v397_v63 = vmul.f32 1.442695, %v394_v62 }
 0x25b   :  { %v389_v0 = vpop.xlane.xlu0 %388 }
 0x25c   :  { %1478 = vpow2.f32 %v397_v63  ;;  %v393_v2 = vsub.f32 %v335_v57, %v389_v0 }
 0x25e   :  { %v395_v4 = vmul.f32 1.442695, %v393_v2 }
 0x260   :  { %1480 = vpow2.f32 %v395_v4 }
 0x266   :  { %v1690_v5 = vpop.eup %1478 }
 0x267   :  { %v406_v7 = vpack.c.bf16 %v1690_v5, %v1690_v5 }
 0x269   :  { %1368 = vmatmul.mubr.msk.bf16.vlgmr.msra.gmra.mrb[8].mxu0 %vm386_vm6, %v406_v7 }
 0x26a   :  { %v1698_v8 = vpop.eup %1480  ;;  %1380 = vmatpush3.bf16.msra.mxu0 %v1464_v6  ;;  %1383 = vmatprep.mubr.msk.bf16.mxu0 %vm1519_vm0, %v1518_v1 }
 0x26b   :  { %v405_v11 = vpack.c.bf16 %v1698_v8, %v1698_v8  ;;  %1381 = vmatprep.subr.bf16.mxu0 %v1518_v1 }
 0x26d   :  { %1362 = vmatmul.mubr.msk.bf16.vlgmr.msra.gmra.mrb[12].mxu1 %vm386_vm6, %v405_v11 }
 0x26e   :  { %1382 = vmatpush3.bf16.msra.mxu0 %v1465_v9  ;;  %1372 = vmatpush3.bf16.msra.mxu1 %v1466_v10 }
 0x26f   :  { %1373 = vmatprep.subr.bf16.mxu1 %v1518_v1  ;;  %1375 = vmatprep.mubr.msk.bf16.mxu1 %vm1519_vm0, %v1518_v1 }
 0x270   :  { %1395 = vmatprep.subr.bf16.mxu0 %v1518_v1 }
 0x271   :  { %1384 = vmatmul.mubr.msk.bf16.vlgmr.msra.gmra.mrb[12].mxu0 %vm90_vm1, %v1622_v3 }
 0x272   :  { %1374 = vmatpush3.bf16.msra.mxu1 %v1467_v12  ;;  %1397 = vmatprep.mubr.msk.bf16.mxu0 %vm1519_vm0, %v1518_v1 }
 0x273   :  { %1387 = vmatprep.subr.bf16.mxu1 %v1518_v1 }
 0x275   :  { %1376 = vmatmul.mubr.msk.bf16.vlgmr.msra.gmra.mrb[16].mxu1 %vm90_vm1, %v1622_v3 }
 0x276   :  { %1391 = vmatprep.mubr.msk.bf16.mxu1 %vm1519_vm0, %v1518_v1  ;;  %1388 = vmatpush3.bf16.msra.mxu1 %v1468_v13 }
 0x277   :  { %1389 = vmatprep.subr.bf16.mxu1 %v1518_v1 }
 0x27a   :  { %1390 = vmatpush3.bf16.msra.mxu1 %v1469_v14 }
 0x27b   :  { %1401 = vmatprep.subr.bf16.mxu1 %v1518_v1 }
 0x27d   :  { %1392 = vmatmul.mubr.msk.bf16.vlgmr.msra.gmra.mrb[20].mxu1 %vm90_vm1, %v1622_v3 }
 0x27e   :  { %1403 = vmatprep.mubr.msk.bf16.mxu1 %vm1519_vm0, %v1518_v1 }
 0x33c   :  { %v1740_v15 = vpop.f32.mrb[8].mxu0 }
 0x33d   :  { %v1369_v16 = vpop.f32.mrb[9].mxu0 }
 0x33e   :  { %v497_v17 = vpop.f32.mrb[10].mxu0  ;;  %v399_v16 = vsel %vm386_vm6, %v1698_v8, 0.0 }
 0x33f   :  { %v1370_v18 = vpop.f32.mrb[11].mxu0 }
 0x340   :  { %v1742_v19 = vpop.f32.mrb[12].mxu1 }
 0x341   :  { %v1363_v20 = vpop.f32.mrb[13].mxu1 }
 0x342   :  { %v451_v21 = vpop.f32.mrb[14].mxu1  ;;  %v402_v20 = vsel %vm386_vm6, %v1690_v5, 0.0  ;;  %v1470_v5 = vld [vmem:[%s1858_s9] sm:$0xff]  }
 0x343   :  { %v1364_v23 = vpop.f32.mrb[15].mxu1 }
 0x344   :  { %v632_v24 = vpop.f32.mrb[12].mxu0 }
 0x345   :  { %v633_v25 = vadd.f32 %v1229_v22, %v632_v24  ;;  %v1385_v3 = vpop.f32.mrb[13].mxu0 }
 0x346   :  { %v635_v26 = vpop.f32.mrb[14].mxu0 }
 0x347   :  { %v1274_v28 = vpack.c.bf16 %v633_v25, %v633_v25  ;;  %v636_v29 = vadd.f32 %v1229_v22, %v635_v26  ;;  %v1386_v30 = vpop.f32.mrb[15].mxu0 }
 0x348   :  { %v565_v31 = vpop.f32.mrb[16].mxu1 }
 0x349   :  { %v726_v32 = vsel %vm293_vm2, %v1274_v28, 0  ;;  %v1275_v33 = vpack.c.bf16 %v636_v29, %v636_v29  ;;  %v566_v34 = vadd.f32 %v1220_v27, %v565_v31  ;;  %v1377_v35 = vpop.f32.mrb[17].mxu1  ;;  %v1471_v28 = vld [vmem:[%s1858_s9 + $0x8] sm:$0xff]  }
 0x34a   :  { %1396 = vmatpush3.bf16.xpose.msra.mxu0 %v726_v32  ;;  %v568_v36 = vpop.f32.mrb[18].mxu1 }
 0x34b   :  { %v772_v37 = vsel %vm293_vm2, %v1275_v33, 0  ;;  %v1378_v38 = vpop.f32.mrb[19].mxu1  ;;  %1407 = vmatprep.subr.bf16.mxu0 %v1518_v1  ;;  %v1272_v39 = vpack.c.bf16 %v566_v34, %v566_v34  ;;  %v569_v40 = vadd.f32 %v1220_v27, %v568_v36  ;;  %v54_v34 = vld [vmem:[%s1851_s2] sm:$0xff] }
 0x34c   :  { %1402 = vmatpush3.bf16.xpose.msra.mxu1 %v772_v37  ;;  %v1521_v38 = vmov 0  }
 0x34d   :  { %1413 = vmatprep.subr.bf16.mxu1 %v1518_v1  ;;  %v1273_v41 = vpack.c.bf16 %v569_v40, %v569_v40  ;;  %1455 = vset.pattern.permute.xlu1 %v1521_v38 }
 0x34e   :  { %1456 = vset.pattern.permute.xlu0 %v1521_v38 }
 0x350   :  { %v699_v43 = vpop.f32.mrb[20].mxu1 }
 0x351   :  { %1398 = vmatmul.mubr.msk.bf16.vlgmr.msra.gmra.mrb[16].mxu0 %vm293_vm2, %v1272_v39  ;;  %v700_v44 = vadd.f32 %v1238_v42, %v699_v43  ;;  %v1393_v45 = vpop.f32.mrb[21].mxu1 }
 0x352   :  { %1409 = vmatprep.mubr.msk.bf16.mxu0 %vm1519_vm0, %v1518_v1  ;;  %v702_v46 = vpop.f32.mrb[22].mxu1  ;;  %v1472_v45 = vld [vmem:[%s1860_s11] sm:$0xff]  }
 0x353   :  { %1404 = vmatmul.mubr.msk.bf16.vlgmr.msra.gmra.mrb[24].mxu1 %vm293_vm2, %v1273_v41  ;;  %v1276_v48 = vpack.c.bf16 %v700_v44, %v700_v44  ;;  %v703_v50 = vadd.f32 %v1238_v42, %v702_v46  ;;  %v1394_v51 = vpop.f32.mrb[23].mxu1  ;;  %v55_v42 = vld [vmem:[%s1851_s2 + $0x8] sm:$0xff] }
 0x354   :  { %1415 = vmatprep.mubr.msk.bf16.mxu1 %vm1519_vm0, %v1518_v1  ;;  %v1473_v46 = vld [vmem:[%s1860_s11 + $0x8] sm:$0xff]  }
 0x355   :  { %v838_v52 = vsel %vm410_vm3, %v1276_v48, 0  ;;  %v1277_v53 = vpack.c.bf16 %v703_v50, %v703_v50  ;;  %v1474_v48 = vld [vmem:[%s1862_s13] sm:$0xff]   ;;  %v1475_v50 = vld [vmem:[%s1862_s13 + $0x8] sm:$0xff]  }
 0x356   :  { %1408 = vmatpush3.bf16.msra.mxu0 %v838_v52  ;;  %v1252_v52 = vld [vmem:[%s1859_s10] ss:$0 sm:$0xff] }
 0x357   :  { %v884_v54 = vsel %vm410_vm3, %v1277_v53, 0  ;;  %1419 = vmatprep.subr.bf16.mxu0 %v1518_v1 }
 0x358   :  { %1414 = vmatpush3.bf16.msra.mxu1 %v884_v54 }
 0x359   :  { %1427 = vmatprep.subr.bf16.mxu1 %v1518_v1 }
 0x424   :  { %v762_v55 = vpop.f32.mrb[16].mxu0 }
 0x425   :  { %v763_v56 = vadd.f32 %v762_v55, %v1684_v49  ;;  %v1399_v57 = vpop.f32.mrb[17].mxu0 }
 0x426   :  { %v765_v58 = vpop.f32.mrb[18].mxu0  ;;  %v808_v59 = vpop.f32.mrb[24].mxu1 }
 0x427   :  { %v809_v60 = vadd.f32 %v808_v59, %v1682_v47  ;;  %v1400_v61 = vpop.f32.mrb[19].mxu0  ;;  %v1405_v62 = vpop.f32.mrb[25].mxu1  ;;  %v814_v63 = vsel %vm386_vm6, %v763_v56, -inf }
 0x428   :  { %815 = vmax.xlane.f32.xlu1 %v814_v63  ;;  %v811_v0 = vpop.f32.mrb[26].mxu1  ;;  %v1476_v63 = vld [vmem:[%s1862_s13 + $0x10] sm:$0xff]  }
 0x429   :  { %v1406_v2 = vpop.f32.mrb[27].mxu1  ;;  %v817_v4 = vsel %vm386_vm6, %v809_v60, -inf  ;;  %v1477_v0 = vld [vmem:[%s1862_s13 + $0x18] sm:$0xff]  }
 0x42a   :  { %v1256_v2 = vld [vmem:[%s1861_s12] ss:$0 sm:$0xff]  ;;  %s1523_s12 = smov [#allocation3]  }
 0x42b   :  { %s1181_s13 = sshll.u32 %s1523_s12, 4  ;;  %s1182_s13 = int_to_ptr.vmem [resolvable:$true] %s1181_s13 }
 0x42c   :  { %818 = vmax.xlane.f32.xlu1 %v817_v4  ;;  %s1494_s8 = scalar_lea.vmem %s1182_s13, 256  ;;  %p1499_p1 = scmp.lt.s32.totalorder %s1182_s13, %s1182_s13 }
 0x42d   :  { %p1495_p0 = scmp.ne.s32.totalorder %s1182_s13, %s1494_s8  ;;  %p1500_p2 = scmp.lt.s32.totalorder %s1494_s8, %s1494_s8 }
 0x42f   :  { %p1501_p3 = por %p1500_p2, %p1499_p1 }
 0x431   :  { %p1502_p4 = pnand %p1501_p3, %p1495_p0 }
 0x4b5   :  { %v816_v6 = vpop.xlane.xlu1 %815 }
 0x4b6   :  { %v820_v7 = vsub.f32 %v763_v56, %v816_v6 }
 0x4b8   :  { %v822_v9 = vmul.f32 1.442695, %v820_v7 }
 0x4b9   :  { %v819_v10 = vpop.xlane.xlu1 %818 }
 0x4ba   :  { %1482 = vpow2.f32 %v822_v9  ;;  %v821_v49 = vsub.f32 %v809_v60, %v819_v10 }
 0x4bc   :  { %v824_v11 = vmul.f32 1.442695, %v821_v49 }
 0x4be   :  { %1484 = vpow2.f32 %v824_v11 }
 0x4c4   :  { %v1483_v12 = vpop.eup %1482 }
 0x4c5   :  { %v826_v47 = vsel %vm386_vm6, %v1483_v12, 0.0  ;;  %v832_v13 = vpack.c.bf16 %v1483_v12, %v1483_v12 }
 0x4c6   :  { %827 = vadd.xlane.f32.xlu0 %v826_v47 }
 0x4c7   :  { %1410 = vmatmul.mubr.msk.bf16.vlgmr.msra.gmra.mrb[20].mxu0 %vm386_vm6, %v832_v13 }
 0x4c8   :  { %v1485_v14 = vpop.eup %1484  ;;  %1423 = vmatprep.mubr.msk.bf16.mxu0 %vm1519_vm0, %v1518_v1  ;;  %1420 = vmatpush3.bf16.msra.mxu0 %v1470_v5 }
 0x4c9   :  { %v829_v17 = vsel %vm386_vm6, %v1485_v14, 0.0  ;;  %v833_v18 = vpack.c.bf16 %v1485_v14, %v1485_v14  ;;  %1421 = vmatprep.subr.bf16.mxu0 %v1518_v1 }
 0x4ca   :  { %400 = vadd.xlane.f32.xlu0 %v399_v16  ;;  %830 = vadd.xlane.f32.xlu1 %v829_v17 }
 0x4cb   :  { %1416 = vmatmul.mubr.msk.bf16.vlgmr.msra.gmra.mrb[28].mxu1 %vm386_vm6, %v833_v18 }
 0x4cc   :  { %1431 = vmatprep.mubr.msk.bf16.mxu1 %vm1519_vm0, %v1518_v1  ;;  %1422 = vmatpush3.bf16.msra.mxu0 %v1471_v28 }
 0x4cd   :  { %1435 = vmatprep.subr.bf16.mxu0 %v1518_v1  ;;  %1428 = vmatpush3.bf16.msra.mxu1 %v1472_v45 }
 0x4ce   :  { %403 = vadd.xlane.f32.xlu1 %v402_v20  ;;  %1429 = vmatprep.subr.bf16.mxu1 %v1518_v1 }
 0x4d1   :  { %1430 = vmatpush3.bf16.msra.mxu1 %v1473_v46 }
 0x4df   :  { %1007 = vperm.xlu1 %1455, %v54_v34  }
 0x4e3   :  { %1012 = vperm.xlu1 %1455, %v55_v42  }
 0x553   :  { %v828_v21 = vpop.xlane.xlu0 %827 }
 0x557   :  { %v401_v22 = vpop.xlane.xlu0 %400  ;;  %v831_v23 = vpop.xlane.xlu1 %830 }
 0x558   :  { %1486 = vrcp.f32 %v401_v22 }
 0x55b   :  { %v404_v24 = vpop.xlane.xlu1 %403 }
 0x55c   :  { %1488 = vrcp.f32 %v404_v24 }
 0x55d   :  { %1490 = vrcp.f32 %v828_v21 }
 0x55e   :  { %1492 = vrcp.f32 %v831_v23 }
 0x55f   :  { %v1008_v51 = vpop.permute.xlu1 %1007 }
 0x562   :  { %v1487_v8 = vpop.eup %1486 }
 0x563   :  { %v502_v3 = vmul.f32 %v1487_v8, %v1742_v19  ;;  %v1013_v59 = vpop.permute.xlu1 %1012 }
 0x566   :  { %v1489_v25 = vpop.eup %1488 }
 0x567   :  { %v503_v26 = vmul.f32 %v1489_v25, %v1740_v15  ;;  %v1491_v15 = vpop.eup %1490 }
 0x568   :  { %v1493_v32 = vpop.eup %1492 }
 0x569   :  { %v504_v27 = vpack.c.bf16 %v503_v26, %v502_v3 }
 0x56b   :  { %505 = vst.msk [vmem:[#allocation2] sm:$0xff] %vm293_vm2, %v504_v27 }
 0x59a   :  { %v874_v29 = vpop.f32.mrb[20].mxu0 }
 0x59b   :  { %v1411_v19 = vpop.f32.mrb[21].mxu0  ;;  %v928_v35 = vmul.f32 %v1491_v15, %v874_v29 }
 0x59c   :  { %v877_v30 = vpop.f32.mrb[22].mxu0 }
 0x59d   :  { %v1412_v31 = vpop.f32.mrb[23].mxu0 }
 0x59e   :  { %v920_v33 = vpop.f32.mrb[28].mxu1 }
 0x59f   :  { %v929_v36 = vmul.f32 %v1493_v32, %v920_v33  ;;  %v1417_v37 = vpop.f32.mrb[29].mxu1 }
 0x5a0   :  { %v923_v39 = vpop.f32.mrb[30].mxu1 }
 0x5a1   :  { %v930_v40 = vpack.c.bf16 %v929_v36, %v928_v35  ;;  %v1418_v41 = vpop.f32.mrb[31].mxu1 }
 0x5a3   :  { %932 = vrot.lane.b32.xlu0 %v930_v40, %s1522_s27 }
 0x615   :  { %v933_v43 = vpop.permute.xlu0 %932 }
 0x616   :  { %936 = vst.msk [vmem:[#allocation2] sm:$0xff] %vm935_vm7, %v933_v43 }
 0x61d   :  { %v937_v44 = vld [vmem:[#allocation2] sm:$0xff] }
 0x61e   :  { %1424 = vmatmul.mubr.msk.bf16.vlgmr.msra.gmra.mrb[24].mxu0 %vm90_vm1, %v937_v44 }
 0x61f   :  { %1443 = vmatprep.mubr.msk.bf16.mxu0 %vm1519_vm0, %v1518_v1  ;;  %1436 = vmatpush3.bf16.msra.mxu0 %v1474_v48 }
 0x620   :  { %1437 = vmatprep.subr.bf16.mxu0 %v1518_v1 }
 0x623   :  { %1438 = vmatpush3.bf16.msra.mxu0 %v1475_v50 }
 0x624   :  { %1439 = vmatprep.subr.bf16.mxu0 %v1518_v1 }
 0x627   :  { %1440 = vmatpush3.bf16.msra.mxu0 %v1476_v63 }
 0x628   :  { %1441 = vmatprep.subr.bf16.mxu0 %v1518_v1  ;;  %v1260_v1 = vld [vmem:[%s1863_s14] ss:$0 sm:$0xff] }
 0x62b   :  { %1442 = vmatpush3.bf16.msra.mxu0 %v1477_v0 }
 0x6f1   :  { %v998_v53 = vpop.f32.mrb[24].mxu0 }
 0x6f2   :  { %v999_v54 = vadd.f32 %v1252_v52, %v998_v53  ;;  %v1425_v55 = vpop.f32.mrb[25].mxu0 }
 0x6f3   :  { %v1001_v56 = vpop.f32.mrb[26].mxu0 }
 0x6f4   :  { %v1002_v57 = vadd.f32 %v1252_v52, %v1001_v56  ;;  %v1426_v58 = vpop.f32.mrb[27].mxu0  ;;  %v1015_v60 = vmul.f32 %v1008_v51, %v999_v54 }
 0x6f6   :  { %v1016_v61 = vmul.f32 %v1013_v59, %v1002_v57 }
 0x6f8   :  { %v1017_v62 = vpack.c.bf16 %v1016_v61, %v1015_v60 }
 0x6fa   :  { %1432 = vmatmul.mubr.msk.bf16.vlgmr.msra.gmra.mrb[32].mxu1 %vm90_vm1, %v1017_v62 }
 0x7cd   :  { %v1078_v4 = vpop.f32.mrb[32].mxu1 }
 0x7ce   :  { %v1079_v6 = vadd.f32 %v1256_v2, %v1078_v4  ;;  %v1433_v7 = vpop.f32.mrb[33].mxu1 }
 0x7cf   :  { %v1081_v9 = vpop.f32.mrb[34].mxu1 }
 0x7d0   :  { %v1082_v10 = vadd.f32 %v1256_v2, %v1081_v9  ;;  %v1434_v49 = vpop.f32.mrb[35].mxu1  ;;  %v1085_v11 = vmax.f32 %v1079_v6, 0.0 }
 0x7d2   :  { %v1086_v12 = vmax.f32 %v1082_v10, 0.0 }
 0x7d4   :  { %v1087_v47 = vpack.c.bf16 %v1086_v12, %v1085_v11 }
 0x7d6   :  { %1444 = vmatmul.mubr.msk.bf16.vlgmr.msra.gmra.mrb[28].mxu0 %vm1127_vm8, %v1087_v47 }
 0x8a9   :  { %v1165_v13 = vpop.f32.mrb[28].mxu0 }
 0x8aa   :  { %v1166_v14 = vadd.f32 %v1260_v1, %v1165_v13  ;;  %v1445_v16 = vpop.f32.mrb[29].mxu0 }
 0x8ab   :  { %v1168_v17 = vpop.f32.mrb[30].mxu0 }
 0x8ac   :  { %v1172_v18 = vmul.f32 %v1166_v14, %v1008_v51  ;;  %v1169_v20 = vadd.f32 %v1260_v1, %v1168_v17  ;;  %v1446_v21 = vpop.f32.mrb[31].mxu0 }
 0x8ae   :  { %1174 = vst.msk [vmem:[#allocation3] sm:$0xff] %vm90_vm1, %v1172_v18  ;;  %v1173_v22 = vmul.f32 %v1169_v20, %v1013_v59 }
 0x8b0   :  { %1175 = vst.msk [vmem:[#allocation3 + $0x8] sm:$0xff] %vm90_vm1, %v1173_v22 }
 0x8b1   :  { %1505 = shalt.err (!%p1502_p4)
}
 0x8b2   :  { %s1506_s23 = scalar_lea.hbm %s1864_s15, 256 }
 0x8b3   :  { %p1507_p5 = scmp.ne.s32.totalorder %s1864_s15, %s1506_s23  ;;  %p1510_p6 = scmp.lt.u32.totalorder %s1506_s23, %s1864_s15 }
 0x8b5   :  { %p1512_p7 = pnand %p1510_p6, %p1507_p5 }
 0x8b7   :  { %1515 = shalt.err (!%p1512_p7)
}
 0x8b8   :  { %s1524_s26 = smov 128   ;;  %s1525_s27 = smov 8  }
 0x8b9   :  { %1187 = dma.vmem_to_hbm [thread:$0]  %s1182_s13, 256, %s1864_s15, [#allocation4], %s1524_s26, %s1524_s26, %s1525_s27  }
 0x8ba   :  { %1516 = dma.done.wait [#allocation4], 256  }
 0x8bb   :  { %1517 = vsyncadd [#allocation4], 4294967040 }
 0x8bc   :  { %1191 = vsyncpa [#allocation4], 1 }

</bundles_post_ra>
